<compile_context>
chip_gen: v7x
topology: tpu7x:2x2x1
jax: 0.10.0
libtpu: 0.0.40
codegen_flags: <defaults>
</compile_context>

<pallas_src>
import functools

import jax
import jax.numpy as jnp
from jax.experimental import pallas as pl
from jax.experimental.pallas import tpu as pltpu


def _softplus(x):
    # PyTorch nn.Softplus default: beta=1, threshold=20 -> linear above threshold.
    return jnp.where(x > 20.0, x, jnp.log1p(jnp.exp(jnp.minimum(x, 20.0))))


# ---------------------------------------------------------------------------
# Fused kernel: first linear + all residual blocks + last linear.
# The activation stays resident in VMEM/vregs for the whole network.
# ---------------------------------------------------------------------------
def _fused_mlp_kernel(x_ref, wf_ref, bf_ref, w1_ref, b1_ref, w2_ref, b2_ref,
                      wl_ref, bl_ref, o_ref, *, n_blocks):
    # First linear + softplus.
    h = _softplus(
        jnp.dot(x_ref[...], wf_ref[...], preferred_element_type=jnp.float32)
        + bf_ref[...]
    )
    # Residual blocks (static unroll; n_blocks is a compile-time constant and
    # the weight stacks are tiny, so full unrolling is cheap).
    for k in range(n_blocks):
        t = _softplus(
            jnp.dot(h, w1_ref[k], preferred_element_type=jnp.float32) + b1_ref[k]
        )
        res = jnp.dot(t, w2_ref[k], preferred_element_type=jnp.float32) + b2_ref[k]
        h = _softplus(res + h)
    # Last linear (no activation).
    y = jnp.dot(h, wl_ref[...], preferred_element_type=jnp.float32) + bl_ref[...]
    o_ref[...] = y.astype(o_ref.dtype)


def _pick_tile_n(n, requested=512):
    """Row tile: big enough to amortize per-grid-step overhead, small enough to
    keep >= 2 grid steps (so both v7x TensorCores get work) when N allows."""
    if n <= 128:
        return n                       # one tile == full extent (tiling rule ok)
    if n <= 2 * requested:
        half = -(-n // 2)              # split rows in two for megacore
        return -(-half // 8) * 8       # round up to a sublane multiple
    return requested


def residual_mlp_pallas(params, x, *, tile_n=512):
    n, in_size = x.shape
    wf, bf = params["first"]
    w1s, b1s, w2s, b2s = params["blocks"]
    wl, bl = params["last"]
    n_blocks, hidden, _ = w1s.shape
    out_size = wl.shape[1]

    tn = _pick_tile_n(n, tile_n)
    grid = (pl.cdiv(n, tn),)

    # Advisory cost hint for XLA's scheduler.
    flops = 2 * n * (in_size * hidden
                     + 2 * n_blocks * hidden * hidden
                     + hidden * out_size)
    transcendentals = 2 * n * hidden * (1 + 2 * n_blocks)   # exp + log1p per softplus
    bytes_accessed = 4 * (x.size + n * out_size + wf.size + bf.size
                          + w1s.size + b1s.size + w2s.size + b2s.size
                          + wl.size + bl.size)

    def full(shape):
        nd = len(shape)
        return pl.BlockSpec(shape, lambda i, _nd=nd: (0,) * _nd)

    return pl.pallas_call(
        functools.partial(_fused_mlp_kernel, n_blocks=n_blocks),
        out_shape=jax.ShapeDtypeStruct((n, out_size), x.dtype),
        grid_spec=pltpu.PrefetchScalarGridSpec(
            num_scalar_prefetch=0,
            grid=grid,
            in_specs=[
                pl.BlockSpec((tn, in_size), lambda i: (i, 0)),   # x rows
                full(wf.shape), full(bf.shape),                  # first linear
                full(w1s.shape), full(b1s.shape),                # stacked block W1/b1
                full(w2s.shape), full(b2s.shape),                # stacked block W2/b2
                full(wl.shape), full(bl.shape),                  # last linear
            ],
            out_specs=pl.BlockSpec((tn, out_size), lambda i: (i, 0)),
        ),
        compiler_params=pltpu.CompilerParams(
            dimension_semantics=("parallel",),
        ),
        cost_estimate=pl.CostEstimate(
            flops=flops,
            transcendentals=transcendentals,
            bytes_accessed=bytes_accessed,
        ),
    )(x, wf, bf, w1s, b1s, w2s, b2s, wl, bl)


# ---------------------------------------------------------------------------
# Parameter construction (deterministic, synthetic; PyTorch-style uniform init)
# Block params are stacked: [n_blocks, H, H] weights, [n_blocks, 1, H] biases.
# ---------------------------------------------------------------------------
def init_params(key, in_size, layers, out_size):
    hidden = layers[0]
    # Fused kernel assumes a uniform hidden width (the PyTorch module would
    # shape-error at runtime otherwise, since the block shortcut is Identity).
    assert all(h == hidden for h in layers), "layers must share one hidden width"
    n_blocks = len(layers)

    def linear_init(k, fan_in, fan_out):
        kw, kb = jax.random.split(k)
        bound = 1.0 / jnp.sqrt(jnp.asarray(fan_in, jnp.float32))
        w = jax.random.uniform(kw, (fan_in, fan_out), jnp.float32, -bound, bound)
        b = jax.random.uniform(kb, (1, fan_out), jnp.float32, -bound, bound)
        return w, b

    keys = jax.random.split(key, 2 + 2 * n_blocks)
    ki = 0
    params = {}

    params["first"] = linear_init(keys[ki], in_size, hidden); ki += 1

    w1s, b1s, w2s, b2s = [], [], [], []
    for _ in range(n_blocks):
        w1, b1 = linear_init(keys[ki], hidden, hidden); ki += 1
        w2, b2 = linear_init(keys[ki], hidden, hidden); ki += 1
        w1s.append(w1); b1s.append(b1); w2s.append(w2); b2s.append(b2)
    params["blocks"] = (jnp.stack(w1s), jnp.stack(b1s),
                        jnp.stack(w2s), jnp.stack(b2s))

    # Last linear: init_map_weights fills weight with 0.0001 (bias keeps its init).
    _, b_last = linear_init(keys[ki], hidden, out_size); ki += 1
    w_last = jnp.full((hidden, out_size), 1e-4, jnp.float32)
    params["last"] = (w_last, b_last)
    return params


# ---------------------------------------------------------------------------
# Pure-JAX reference
# ---------------------------------------------------------------------------
def residual_mlp_ref(params, x):
    wf, bf = params["first"]
    w1s, b1s, w2s, b2s = params["blocks"]
    wl, bl = params["last"]
    h = _softplus(x @ wf + bf)
    for k in range(w1s.shape[0]):
        t = _softplus(h @ w1s[k] + b1s[k])
        res = t @ w2s[k] + b2s[k]
        h = _softplus(res + h)
    return h @ wl + bl


if __name__ == "__main__":
    # config: {'input_size': 3, 'output_size': 1, 'layers': [32, 32]}
    in_size, out_size, layers = 3, 1, [32, 32]
    n_points = 256

    key = jax.random.PRNGKey(0)
    k_params, k_x = jax.random.split(key)
    params = init_params(k_params, in_size, layers, out_size)
    x = jax.random.normal(k_x, (n_points, in_size), jnp.float32)

    out = jax.block_until_ready(residual_mlp_pallas(params, x))
    ref = jax.block_until_ready(residual_mlp_ref(params, x))

    assert out.shape == (n_points, out_size), out.shape
    assert jnp.allclose(out, ref, atol=1e-5, rtol=1e-5), float(
        jnp.max(jnp.abs(out - ref))
    )
    print("KERNEL_OK")
</pallas_src>

<mosaic_0001>
module attributes {stable_mosaic.version = 11 : i64} {
  func.func @_fused_mlp_kernel(%arg0: i32, %arg1: memref<128x3xf32, #tpu.memory_space<vmem>>, %arg2: memref<3x32xf32, #tpu.memory_space<vmem>>, %arg3: memref<1x32xf32, #tpu.memory_space<vmem>>, %arg4: memref<2x32x32xf32, #tpu.memory_space<vmem>>, %arg5: memref<2x1x32xf32, #tpu.memory_space<vmem>>, %arg6: memref<2x32x32xf32, #tpu.memory_space<vmem>>, %arg7: memref<2x1x32xf32, #tpu.memory_space<vmem>>, %arg8: memref<32x1xf32, #tpu.memory_space<vmem>>, %arg9: memref<1x1xf32, #tpu.memory_space<vmem>>, %arg10: memref<128x1xf32, #tpu.memory_space<vmem>>) attributes {dimension_semantics = [#tpu.dimension_semantics<parallel>], iteration_bounds = array<i64: 2>, scalar_prefetch = 0 : i64, scratch_operands = 0 : i64, tpu.core_type = #tpu.core_type<tc>, window_params = [{transform_indices = @transform_0, window_bounds = array<i64: 128, 3>}, {pipeline_mode = #tpu.pipeline_mode<synchronous>, transform_indices = @transform_1, window_bounds = array<i64: 3, 32>}, {pipeline_mode = #tpu.pipeline_mode<synchronous>, transform_indices = @transform_2, window_bounds = array<i64: 1, 32>}, {pipeline_mode = #tpu.pipeline_mode<synchronous>, transform_indices = @transform_3, window_bounds = array<i64: 2, 32, 32>}, {pipeline_mode = #tpu.pipeline_mode<synchronous>, transform_indices = @transform_4, window_bounds = array<i64: 2, 1, 32>}, {pipeline_mode = #tpu.pipeline_mode<synchronous>, transform_indices = @transform_5, window_bounds = array<i64: 2, 32, 32>}, {pipeline_mode = #tpu.pipeline_mode<synchronous>, transform_indices = @transform_6, window_bounds = array<i64: 2, 1, 32>}, {pipeline_mode = #tpu.pipeline_mode<synchronous>, transform_indices = @transform_7, window_bounds = array<i64: 32, 1>}, {pipeline_mode = #tpu.pipeline_mode<synchronous>, transform_indices = @transform_8, window_bounds = array<i64: 1, 1>}, {transform_indices = @transform_9, window_bounds = array<i64: 128, 1>}]} {
    %c0 = arith.constant 0 : index
    %c0_0 = arith.constant 0 : index
    %0 = vector.load %arg1[%c0, %c0_0] : memref<128x3xf32, #tpu.memory_space<vmem>>, vector<128x3xf32>
    %c0_1 = arith.constant 0 : index
    %c0_2 = arith.constant 0 : index
    %1 = vector.load %arg2[%c0_1, %c0_2] : memref<3x32xf32, #tpu.memory_space<vmem>>, vector<3x32xf32>
    %cst = arith.constant dense<0.000000e+00> : vector<128x32xf32>
    %2 = tpu.matmul %0, %1, %cst {dimension_numbers = #tpu.dot_dimension_numbers<[1], [0], [0], [1], [0, 0, 1, 1], [], []>} : vector<128x3xf32>, vector<3x32xf32>, vector<128x32xf32> -> vector<128x32xf32>
    %c0_3 = arith.constant 0 : index
    %c0_4 = arith.constant 0 : index
    %3 = vector.load %arg3[%c0_3, %c0_4] : memref<1x32xf32, #tpu.memory_space<vmem>>, vector<1x32xf32>
    %4 = vector.broadcast %3 : vector<1x32xf32> to vector<128x32xf32>
    %5 = arith.addf %2, %4 : vector<128x32xf32>
    %cst_5 = arith.constant 2.000000e+01 : f32
    %6 = vector.broadcast %cst_5 : f32 to vector<128x32xf32>
    %7 = arith.cmpf ogt, %5, %6 : vector<128x32xf32>
    %cst_6 = arith.constant 2.000000e+01 : f32
    %8 = vector.broadcast %cst_6 : f32 to vector<128x32xf32>
    %9 = arith.minimumf %5, %8 : vector<128x32xf32>
    %10 = math.exp %9 : vector<128x32xf32>
    %11 = math.log1p %10 : vector<128x32xf32>
    %12 = arith.select %7, %5, %11 : vector<128x32xi1>, vector<128x32xf32>
    %c0_7 = arith.constant 0 : index
    %c0_8 = arith.constant 0 : index
    %c0_9 = arith.constant 0 : index
    %13 = vector.load %arg4[%c0_7, %c0_8, %c0_9] : memref<2x32x32xf32, #tpu.memory_space<vmem>>, vector<1x32x32xf32>
    %14 = vector.shape_cast %13 : vector<1x32x32xf32> to vector<32x32xf32>
    %cst_10 = arith.constant dense<0.000000e+00> : vector<128x32xf32>
    %15 = tpu.matmul %12, %14, %cst_10 {dimension_numbers = #tpu.dot_dimension_numbers<[1], [0], [0], [1], [0, 0, 1, 1], [], []>} : vector<128x32xf32>, vector<32x32xf32>, vector<128x32xf32> -> vector<128x32xf32>
    %c0_11 = arith.constant 0 : index
    %c0_12 = arith.constant 0 : index
    %c0_13 = arith.constant 0 : index
    %16 = vector.load %arg5[%c0_11, %c0_12, %c0_13] : memref<2x1x32xf32, #tpu.memory_space<vmem>>, vector<1x1x32xf32>
    %17 = vector.shape_cast %16 : vector<1x1x32xf32> to vector<1x32xf32>
    %18 = vector.broadcast %17 : vector<1x32xf32> to vector<128x32xf32>
    %19 = arith.addf %15, %18 : vector<128x32xf32>
    %cst_14 = arith.constant 2.000000e+01 : f32
    %20 = vector.broadcast %cst_14 : f32 to vector<128x32xf32>
    %21 = arith.cmpf ogt, %19, %20 : vector<128x32xf32>
    %cst_15 = arith.constant 2.000000e+01 : f32
    %22 = vector.broadcast %cst_15 : f32 to vector<128x32xf32>
    %23 = arith.minimumf %19, %22 : vector<128x32xf32>
    %24 = math.exp %23 : vector<128x32xf32>
    %25 = math.log1p %24 : vector<128x32xf32>
    %26 = arith.select %21, %19, %25 : vector<128x32xi1>, vector<128x32xf32>
    %c0_16 = arith.constant 0 : index
    %c0_17 = arith.constant 0 : index
    %c0_18 = arith.constant 0 : index
    %27 = vector.load %arg6[%c0_16, %c0_17, %c0_18] : memref<2x32x32xf32, #tpu.memory_space<vmem>>, vector<1x32x32xf32>
    %28 = vector.shape_cast %27 : vector<1x32x32xf32> to vector<32x32xf32>
    %cst_19 = arith.constant dense<0.000000e+00> : vector<128x32xf32>
    %29 = tpu.matmul %26, %28, %cst_19 {dimension_numbers = #tpu.dot_dimension_numbers<[1], [0], [0], [1], [0, 0, 1, 1], [], []>} : vector<128x32xf32>, vector<32x32xf32>, vector<128x32xf32> -> vector<128x32xf32>
    %c0_20 = arith.constant 0 : index
    %c0_21 = arith.constant 0 : index
    %c0_22 = arith.constant 0 : index
    %30 = vector.load %arg7[%c0_20, %c0_21, %c0_22] : memref<2x1x32xf32, #tpu.memory_space<vmem>>, vector<1x1x32xf32>
    %31 = vector.shape_cast %30 : vector<1x1x32xf32> to vector<1x32xf32>
    %32 = vector.broadcast %31 : vector<1x32xf32> to vector<128x32xf32>
    %33 = arith.addf %29, %32 : vector<128x32xf32>
    %34 = arith.addf %33, %12 : vector<128x32xf32>
    %cst_23 = arith.constant 2.000000e+01 : f32
    %35 = vector.broadcast %cst_23 : f32 to vector<128x32xf32>
    %36 = arith.cmpf ogt, %34, %35 : vector<128x32xf32>
    %cst_24 = arith.constant 2.000000e+01 : f32
    %37 = vector.broadcast %cst_24 : f32 to vector<128x32xf32>
    %38 = arith.minimumf %34, %37 : vector<128x32xf32>
    %39 = math.exp %38 : vector<128x32xf32>
    %40 = math.log1p %39 : vector<128x32xf32>
    %41 = arith.select %36, %34, %40 : vector<128x32xi1>, vector<128x32xf32>
    %c1 = arith.constant 1 : index
    %c0_25 = arith.constant 0 : index
    %c0_26 = arith.constant 0 : index
    %42 = vector.load %arg4[%c1, %c0_25, %c0_26] : memref<2x32x32xf32, #tpu.memory_space<vmem>>, vector<1x32x32xf32>
    %43 = vector.shape_cast %42 : vector<1x32x32xf32> to vector<32x32xf32>
    %cst_27 = arith.constant dense<0.000000e+00> : vector<128x32xf32>
    %44 = tpu.matmul %41, %43, %cst_27 {dimension_numbers = #tpu.dot_dimension_numbers<[1], [0], [0], [1], [0, 0, 1, 1], [], []>} : vector<128x32xf32>, vector<32x32xf32>, vector<128x32xf32> -> vector<128x32xf32>
    %c1_28 = arith.constant 1 : index
    %c0_29 = arith.constant 0 : index
    %c0_30 = arith.constant 0 : index
    %45 = vector.load %arg5[%c1_28, %c0_29, %c0_30] : memref<2x1x32xf32, #tpu.memory_space<vmem>>, vector<1x1x32xf32>
    %46 = vector.shape_cast %45 : vector<1x1x32xf32> to vector<1x32xf32>
    %47 = vector.broadcast %46 : vector<1x32xf32> to vector<128x32xf32>
    %48 = arith.addf %44, %47 : vector<128x32xf32>
    %cst_31 = arith.constant 2.000000e+01 : f32
    %49 = vector.broadcast %cst_31 : f32 to vector<128x32xf32>
    %50 = arith.cmpf ogt, %48, %49 : vector<128x32xf32>
    %cst_32 = arith.constant 2.000000e+01 : f32
    %51 = vector.broadcast %cst_32 : f32 to vector<128x32xf32>
    %52 = arith.minimumf %48, %51 : vector<128x32xf32>
    %53 = math.exp %52 : vector<128x32xf32>
    %54 = math.log1p %53 : vector<128x32xf32>
    %55 = arith.select %50, %48, %54 : vector<128x32xi1>, vector<128x32xf32>
    %c1_33 = arith.constant 1 : index
    %c0_34 = arith.constant 0 : index
    %c0_35 = arith.constant 0 : index
    %56 = vector.load %arg6[%c1_33, %c0_34, %c0_35] : memref<2x32x32xf32, #tpu.memory_space<vmem>>, vector<1x32x32xf32>
    %57 = vector.shape_cast %56 : vector<1x32x32xf32> to vector<32x32xf32>
    %cst_36 = arith.constant dense<0.000000e+00> : vector<128x32xf32>
    %58 = tpu.matmul %55, %57, %cst_36 {dimension_numbers = #tpu.dot_dimension_numbers<[1], [0], [0], [1], [0, 0, 1, 1], [], []>} : vector<128x32xf32>, vector<32x32xf32>, vector<128x32xf32> -> vector<128x32xf32>
    %c1_37 = arith.constant 1 : index
    %c0_38 = arith.constant 0 : index
    %c0_39 = arith.constant 0 : index
    %59 = vector.load %arg7[%c1_37, %c0_38, %c0_39] : memref<2x1x32xf32, #tpu.memory_space<vmem>>, vector<1x1x32xf32>
    %60 = vector.shape_cast %59 : vector<1x1x32xf32> to vector<1x32xf32>
    %61 = vector.broadcast %60 : vector<1x32xf32> to vector<128x32xf32>
    %62 = arith.addf %58, %61 : vector<128x32xf32>
    %63 = arith.addf %62, %41 : vector<128x32xf32>
    %cst_40 = arith.constant 2.000000e+01 : f32
    %64 = vector.broadcast %cst_40 : f32 to vector<128x32xf32>
    %65 = arith.cmpf ogt, %63, %64 : vector<128x32xf32>
    %cst_41 = arith.constant 2.000000e+01 : f32
    %66 = vector.broadcast %cst_41 : f32 to vector<128x32xf32>
    %67 = arith.minimumf %63, %66 : vector<128x32xf32>
    %68 = math.exp %67 : vector<128x32xf32>
    %69 = math.log1p %68 : vector<128x32xf32>
    %70 = arith.select %65, %63, %69 : vector<128x32xi1>, vector<128x32xf32>
    %c0_42 = arith.constant 0 : index
    %c0_43 = arith.constant 0 : index
    %71 = vector.load %arg8[%c0_42, %c0_43] : memref<32x1xf32, #tpu.memory_space<vmem>>, vector<32x1xf32>
    %cst_44 = arith.constant dense<0.000000e+00> : vector<128x1xf32>
    %72 = tpu.matmul %70, %71, %cst_44 {dimension_numbers = #tpu.dot_dimension_numbers<[1], [0], [0], [1], [0, 0, 1, 1], [], []>} : vector<128x32xf32>, vector<32x1xf32>, vector<128x1xf32> -> vector<128x1xf32>
    %c0_45 = arith.constant 0 : index
    %c0_46 = arith.constant 0 : index
    %73 = vector.load %arg9[%c0_45, %c0_46] : memref<1x1xf32, #tpu.memory_space<vmem>>, vector<1x1xf32>
    %74 = vector.broadcast %73 : vector<1x1xf32> to vector<128x1xf32>
    %75 = arith.addf %72, %74 : vector<128x1xf32>
    %c0_47 = arith.constant 0 : index
    %c0_48 = arith.constant 0 : index
    %76 = vector.load %arg10[%c0_47, %c0_48] : memref<128x1xf32, #tpu.memory_space<vmem>>, vector<128x1xf32>
    tpu.vector_store %arg10[%c0_47, %c0_48], %75 {strides = array<i32>} : memref<128x1xf32, #tpu.memory_space<vmem>>, vector<128x1xf32>,
    return
  }
  func.func @transform_0(%arg0: i32) -> (i32, i32) {
    %c0_i32 = arith.constant 0 : i32
    %c0_i32_0 = arith.constant 0 : i32
    return %arg0, %c0_i32 : i32, i32
  }
  func.func @transform_1(%arg0: i32) -> (i32, i32) {
    %c0_i32 = arith.constant 0 : i32
    %c0_i32_0 = arith.constant 0 : i32
    %c0_i32_1 = arith.constant 0 : i32
    return %c0_i32, %c0_i32_0 : i32, i32
  }
  func.func @transform_2(%arg0: i32) -> (i32, i32) {
    %c0_i32 = arith.constant 0 : i32
    %c0_i32_0 = arith.constant 0 : i32
    %c0_i32_1 = arith.constant 0 : i32
    return %c0_i32, %c0_i32_0 : i32, i32
  }
  func.func @transform_3(%arg0: i32) -> (i32, i32, i32) {
    %c0_i32 = arith.constant 0 : i32
    %c0_i32_0 = arith.constant 0 : i32
    %c0_i32_1 = arith.constant 0 : i32
    %c0_i32_2 = arith.constant 0 : i32
    return %c0_i32, %c0_i32_0, %c0_i32_1 : i32, i32, i32
  }
  func.func @transform_4(%arg0: i32) -> (i32, i32, i32) {
    %c0_i32 = arith.constant 0 : i32
    %c0_i32_0 = arith.constant 0 : i32
    %c0_i32_1 = arith.constant 0 : i32
    %c0_i32_2 = arith.constant 0 : i32
    return %c0_i32, %c0_i32_0, %c0_i32_1 : i32, i32, i32
  }
  func.func @transform_5(%arg0: i32) -> (i32, i32, i32) {
    %c0_i32 = arith.constant 0 : i32
    %c0_i32_0 = arith.constant 0 : i32
    %c0_i32_1 = arith.constant 0 : i32
    %c0_i32_2 = arith.constant 0 : i32
    return %c0_i32, %c0_i32_0, %c0_i32_1 : i32, i32, i32
  }
  func.func @transform_6(%arg0: i32) -> (i32, i32, i32) {
    %c0_i32 = arith.constant 0 : i32
    %c0_i32_0 = arith.constant 0 : i32
    %c0_i32_1 = arith.constant 0 : i32
    %c0_i32_2 = arith.constant 0 : i32
    return %c0_i32, %c0_i32_0, %c0_i32_1 : i32, i32, i32
  }
  func.func @transform_7(%arg0: i32) -> (i32, i32) {
    %c0_i32 = arith.constant 0 : i32
    %c0_i32_0 = arith.constant 0 : i32
    %c0_i32_1 = arith.constant 0 : i32
    return %c0_i32, %c0_i32_0 : i32, i32
  }
  func.func @transform_8(%arg0: i32) -> (i32, i32) {
    %c0_i32 = arith.constant 0 : i32
    %c0_i32_0 = arith.constant 0 : i32
    %c0_i32_1 = arith.constant 0 : i32
    return %c0_i32, %c0_i32_0 : i32, i32
  }
  func.func @transform_9(%arg0: i32) -> (i32, i32) {
    %c0_i32 = arith.constant 0 : i32
    %c0_i32_0 = arith.constant 0 : i32
    return %arg0, %c0_i32 : i32, i32
  }
}

</mosaic_0001>

<bundles_post_ra>
// kernel: tpu_custom_call.1
= control target key start
LH: loop header
LB: loop body
LE: loop exit
PB: predicated region body
PF: predicated region fallthrough
CT: control target
= control target key end

     0   :  { %s3666_s11 = smov 0   ;;  %s5191_s0 = inlined_call_operand.vmem [shape: f32[256,3], index: 0, kind: input, shape index: {}]   ;;  %s5192_s1 = inlined_call_operand.vmem [shape: f32[3,32], index: 1, kind: input, shape index: {}]   ;;  %s5193_s2 = inlined_call_operand.vmem [shape: f32[1,32], index: 2, kind: input, shape index: {}]   ;;  %s5194_s3 = inlined_call_operand.vmem [shape: f32[2,32,32], index: 3, kind: input, shape index: {}]   ;;  %s5195_s4 = inlined_call_operand.vmem [shape: f32[2,1,32], index: 4, kind: input, shape index: {}]   ;;  %s5196_s5 = inlined_call_operand.vmem [shape: f32[2,32,32], index: 5, kind: input, shape index: {}]   ;;  %s5197_s6 = inlined_call_operand.vmem [shape: f32[2,1,32], index: 6, kind: input, shape index: {}]   ;;  %s5198_s7 = inlined_call_operand.vmem [shape: f32[32,1], index: 7, kind: input, shape index: {}]   ;;  %s5199_s8 = inlined_call_operand.<no memory space> [shape: f32[1,1], index: 8, kind: input, shape index: {}]   ;;  %s5200_s9 = inlined_call_operand.vmem [shape: f32[256,1], index: 9, kind: output, shape index: {}]  }
   0x1   :  { %v14_v0 = vstv %s5199_s8 }
   0x2   :  { %15 = vst [vmem:[#allocation2] sm:$0x1] %v14_v0 }
   0x3 LB: > { %s2810_s12 = sadd.s32 4294967295, %s3611_s11   ;;  %p2814_p0 = scmp.ge.s32.totalorder %s3611_s11, 1  ;;  %s3611_s11 = sphi %s3666_s11, %s21_s11  }
   0x4   : > { %p290_p1 = scmp.lt.s32.totalorder %s3611_s11, 3 }
   0x6   : > { %p291_p2 = pnand %p2814_p0, %p290_p1 }
   0x7   : > { %v354_v1 = vld [vmem:[%s5192_s1] sm:$0x7] (!%p291_p2)  ;;  %vm411_vm0 = vcmask (!%p291_p2), 1042432   ;;  %s2815_s8 = sshll.u32 (!%p291_p2), %s2810_s12, 4  ;;  %vm362_vm1 = vcmask (!%p291_p2), 23552   ;;  %v785_v19 = vld [vmem:[%s5194_s3 + $0x8] sm:$0xff] (!%p291_p2) }
   0x8   : > { %294 = sbr.rel (%p291_p2) target bundleno = 1533 (0x5fd), region = 56  ;;  %3051 = vmatprep.subr.msk.mxu0 (!%p291_p2), %vm411_vm0, %v354_v1  ;;  %p327_p3 = scmp.lt.s32.totalorder (!%p291_p2), %s2815_s8, 31  ;;  %v784_v18 = vld [vmem:[%s5194_s3] sm:$0xff] (!%p291_p2)  ;;  %v786_v21 = vld [vmem:[%s5194_s3 + $0x10] sm:$0xff] (!%p291_p2)  ;;  %v787_v22 = vld [vmem:[%s5194_s3 + $0x18] sm:$0xff] (!%p291_p2)  ;;  %vm795_vm2 = vcmask (!%p291_p2), 261120  }
   0x9   : > { %3052 = vmatpush3.msk.msra.mxu0 (!%p291_p2), %vm411_vm0, %v354_v1  ;;  %v3237_v20 = vpack.c.bf16 (!%p291_p2), %v785_v19, %v784_v18  ;;  %v3241_v23 = vpack.c.bf16 (!%p291_p2), %v787_v22, %v786_v21  ;;  %v3734_v24 = vld [vmem:[%s5193_s2] ss:$0 sm:$0xff] (!%p291_p2) }
   0xb   : > { %3238 = vmatprep.subr.bf16.mxu1 (!%p291_p2), %v3237_v20 }
   0xc   : > { %3240 = vmatpush3.bf16.msra.mxu1 (!%p291_p2), %v3237_v20 }
   0xd   : > { %3242 = vmatprep.subr.bf16.mxu1 (!%p291_p2), %v3241_v23 }
   0xf   : > { %s5260_s8 = smov (!%p327_p3, %s2815_s8), 31 }
  0x10   : > { %s2816_s15 = sshll.u32 %s5260_s8, 3  ;;  %3244 = vmatpush3.bf16.msra.mxu1 %v3241_v23 }
  0x11   : > { %s3685_s18 = scalar_lea.vmem %s5191_s0, %s2816_s15  ;;  %s5154_s13 = scalar_lea.vmem %s5200_s9, %s2816_s15 }
  0x12   : > { %v338_v2 = vld [vmem:[%s3685_s18] sm:$0xff]  ;;  %v339_v3 = vld [vmem:[%s3685_s18 + $0x8] sm:$0xff]  ;;  %v340_v4 = vld [vmem:[%s3685_s18 + $0x10] sm:$0xff] }
  0x13   : > { %3053 = vmatprep.mubr.msk.f32.mxu0 %vm362_vm1, %v338_v2  ;;  %v341_v5 = vld [vmem:[%s3685_s18 + $0x18] sm:$0xff]  ;;  %v342_v6 = vld [vmem:[%s3685_s18 + $0x20] sm:$0xff]  ;;  %v343_v7 = vld [vmem:[%s3685_s18 + $0x28] sm:$0xff] }
  0x14   : > { %3054 = vmatmul.mubr.msk.f32.vlgmr.msra.gmra.mrb[0].mxu0 %vm362_vm1, %v339_v3  ;;  %v344_v8 = vld [vmem:[%s3685_s18 + $0x30] sm:$0xff]  ;;  %v345_v9 = vld [vmem:[%s3685_s18 + $0x38] sm:$0xff]  ;;  %v346_v10 = vld [vmem:[%s3685_s18 + $0x40] sm:$0xff] }
  0x15   : > { %3056 = vmatprep.mubr.msk.f32.mxu0 %vm362_vm1, %v340_v4  ;;  %v347_v11 = vld [vmem:[%s3685_s18 + $0x48] sm:$0xff]  ;;  %v348_v12 = vld [vmem:[%s3685_s18 + $0x50] sm:$0xff]  ;;  %v349_v13 = vld [vmem:[%s3685_s18 + $0x58] sm:$0xff] }
  0x16   : > { %v350_v14 = vld [vmem:[%s3685_s18 + $0x60] sm:$0xff]  ;;  %v351_v15 = vld [vmem:[%s3685_s18 + $0x68] sm:$0xff]  ;;  %v352_v16 = vld [vmem:[%s3685_s18 + $0x70] sm:$0xff] }
  0x17   : > { %v353_v17 = vld [vmem:[%s3685_s18 + $0x78] sm:$0xff] }
  0x18   : > { %3057 = vmatmul.mubr.msk.f32.gmra.mrb[2].mxu0 %vm362_vm1, %v341_v5 }
  0x19   : > { %3059 = vmatprep.mubr.msk.f32.mxu0 %vm362_vm1, %v342_v6 }
  0x1c   : > { %3060 = vmatmul.mubr.msk.f32.gmra.mrb[4].mxu0 %vm362_vm1, %v343_v7 }
  0x1d   : > { %3062 = vmatprep.mubr.msk.f32.mxu0 %vm362_vm1, %v344_v8 }
  0x20   : > { %3063 = vmatmul.mubr.msk.f32.gmra.mrb[6].mxu0 %vm362_vm1, %v345_v9 }
  0x21   : > { %3065 = vmatprep.mubr.msk.f32.mxu0 %vm362_vm1, %v346_v10 }
  0x24   : > { %3066 = vmatmul.mubr.msk.f32.gmra.mrb[8].mxu0 %vm362_vm1, %v347_v11 }
  0x25   : > { %3068 = vmatprep.mubr.msk.f32.mxu0 %vm362_vm1, %v348_v12 }
  0x28   : > { %3069 = vmatmul.mubr.msk.f32.gmra.mrb[10].mxu0 %vm362_vm1, %v349_v13 }
  0x29   : > { %3071 = vmatprep.mubr.msk.f32.mxu0 %vm362_vm1, %v350_v14 }
  0x2c   : > { %3072 = vmatmul.mubr.msk.f32.gmra.mrb[12].mxu0 %vm362_vm1, %v351_v15 }
  0x2d   : > { %3074 = vmatprep.mubr.msk.f32.mxu0 %vm362_vm1, %v352_v16 }
  0x30   : > { %3075 = vmatmul.mubr.msk.f32.gmra.mrb[14].mxu0 %vm362_vm1, %v353_v17 }
  0xe7   : > { %v3055_v25 = vpop.f32.mrb[0].mxu0 }
  0xe8   : > { %v3737_v26 = vadd.f32 %v3055_v25, %v3734_v24  ;;  %v481_v27 = vpop.f32.mrb[1].mxu0 }
  0xe9   : > { %v3740_v28 = vadd.f32 %v3734_v24, %v481_v27 }
  0xea   : > { %v577_v29 = vmin.f32 %v3737_v26, 20.0  ;;  %vm561_vm3 = vcmp.gt.f32.partialorder %v3737_v26, 20.0 }
  0xeb   : > { %v576_v30 = vmin.f32 %v3740_v28, 20.0  ;;  %v3058_v31 = vpop.f32.mrb[2].mxu0  ;;  %vm560_vm4 = vcmp.gt.f32.partialorder %v3740_v28, 20.0 }
  0xec   : > { %v594_v32 = vmul.f32 1.442695, %v577_v29  ;;  %v3745_v33 = vadd.f32 %v3058_v31, %v3734_v24  ;;  %v491_v34 = vpop.f32.mrb[3].mxu0 }
  0xed   : > { %v592_v35 = vmul.f32 1.442695, %v576_v30  ;;  %v3748_v36 = vadd.f32 %v3734_v24, %v491_v34 }
  0xee   : > { %3285 = vpow2.f32 %v594_v32  ;;  %v579_v39 = vmin.f32 %v3745_v33, 20.0  ;;  %vm563_vm7 = vcmp.gt.f32.partialorder %v3745_v33, 20.0 }
  0xef   : > { %3287 = vpow2.f32 %v592_v35  ;;  %v578_v37 = vmin.f32 %v3748_v36, 20.0  ;;  %v3061_v38 = vpop.f32.mrb[4].mxu0  ;;  %vm562_vm8 = vcmp.gt.f32.partialorder %v3748_v36, 20.0 }
  0xf0   : > { %v501_v40 = vpop.f32.mrb[5].mxu0  ;;  %v3756_v43 = vadd.f32 %v3061_v38, %v3734_v24  ;;  %v598_v46 = vmul.f32 1.442695, %v579_v39 }
  0xf1   : > { %v596_v41 = vmul.f32 1.442695, %v578_v37  ;;  %v3753_v42 = vadd.f32 %v3734_v24, %v501_v40 }
  0xf2   : > { %v581_v50 = vmin.f32 %v3756_v43, 20.0  ;;  %vm565_vm11 = vcmp.gt.f32.partialorder %v3756_v43, 20.0 }
  0xf3   : > { %v580_v44 = vmin.f32 %v3753_v42, 20.0  ;;  %v3064_v45 = vpop.f32.mrb[6].mxu0  ;;  %3289 = vpow2.f32 %v596_v41  ;;  %vm564_vm10 = vcmp.gt.f32.partialorder %v3753_v42, 20.0 }
  0xf4   : > { %v511_v47 = vpop.f32.mrb[7].mxu0  ;;  %v3760_v48 = vadd.f32 %v3064_v45, %v3734_v24  ;;  %3291 = vpow2.f32 %v598_v46  ;;  %v602_v62 = vmul.f32 1.442695, %v581_v50 }
  0xf5   : > { %v3763_v49 = vadd.f32 %v3734_v24, %v511_v47  ;;  %v600_v51 = vmul.f32 1.442695, %v580_v44 }
  0xf6   : > { %v583_v58 = vmin.f32 %v3760_v48, 20.0  ;;  %vm567_vm0 = vcmp.gt.f32.partialorder %v3760_v48, 20.0 }
  0xf7   : > { %v3067_v52 = vpop.f32.mrb[8].mxu0  ;;  %v582_v54 = vmin.f32 %v3763_v49, 20.0  ;;  %3293 = vpow2.f32 %v600_v51  ;;  %vm566_vm12 = vcmp.gt.f32.partialorder %v3763_v49, 20.0 }
  0xf8   : > { %v3766_v53 = vpop.eup %3285  ;;  %v3770_v55 = vadd.f32 %v3067_v52, %v3734_v24  ;;  %v521_v56 = vpop.f32.mrb[9].mxu0  ;;  %v606_v4 = vmul.f32 1.442695, %v583_v58 }
  0xf9   : > { %v3288_v57 = vpop.eup %3287  ;;  %v3774_v59 = vadd.f32 %v3734_v24, %v521_v56  ;;  %v633_v60 = vadd.f32 1.0, %v3766_v53  ;;  %v604_v1 = vmul.f32 1.442695, %v582_v54  ;;  %v636_v10 = vmul.f32 -0.5, %v3766_v53 }
  0xfa   : > { %v624_v61 = vadd.f32 1.0, %v3288_v57  ;;  %v585_v63 = vmin.f32 %v3770_v55, 20.0  ;;  %v627_v9 = vmul.f32 -0.5, %v3288_v57  ;;  %v630_v22 = vand.u32 2147483647, %v3288_v57 }
  0xfb   : > { %v3070_v0 = vpop.f32.mrb[10].mxu0  ;;  %v584_v5 = vmin.f32 %v3774_v59, 20.0  ;;  %v637_v23 = vadd.f32 1.0, %v636_v10  ;;  %v639_v30 = vand.u32 2147483647, %v3766_v53 }
  0xfc   : > { %v3779_v2 = vadd.f32 %v3070_v0, %v3734_v24  ;;  %v531_v3 = vpop.f32.mrb[11].mxu0  ;;  %3295 = vlog2.f32 %v624_v61  ;;  %v610_v11 = vmul.f32 1.442695, %v585_v63  ;;  %v628_v21 = vadd.f32 1.0, %v627_v9 }
  0xfd   : > { %v3783_v6 = vadd.f32 %v3734_v24, %v531_v3  ;;  %3297 = vlog2.f32 %v633_v60  ;;  %v3785_v7 = vpop.eup %3289  ;;  %v608_v16 = vmul.f32 1.442695, %v584_v5  ;;  %vm3814_vm5 = vcmp.lt.f32.partialorder %v630_v22, 0.0004427343 }
  0xfe   : > { %v587_v8 = vmin.f32 %v3779_v2, 20.0  ;;  %3299 = vpow2.f32 %v602_v62  ;;  %v642_v18 = vadd.f32 1.0, %v3785_v7  ;;  %v3797_v19 = vpop.eup %3291  ;;  %v645_v34 = vmul.f32 -0.5, %v3785_v7 }
  0xff   : > { %v586_v12 = vmin.f32 %v3783_v6, 20.0  ;;  %v3073_v13 = vpop.f32.mrb[12].mxu0  ;;  %3301 = vpow2.f32 %v604_v1  ;;  %v651_v39 = vadd.f32 1.0, %v3797_v19  ;;  %v629_v41 = vmul.f32 %v3288_v57, %v628_v21 }
 0x100   : > { %v3791_v14 = vadd.f32 %v3073_v13, %v3734_v24  ;;  %v541_v15 = vpop.f32.mrb[13].mxu0  ;;  %3303 = vpow2.f32 %v606_v4  ;;  %v614_v20 = vmul.f32 1.442695, %v587_v8  ;;  %v638_v45 = vmul.f32 %v3766_v53, %v637_v23 }
 0x101   : > { %v3794_v17 = vadd.f32 %v3734_v24, %v541_v15  ;;  %3305 = vpow2.f32 %v610_v11  ;;  %v612_v25 = vmul.f32 1.442695, %v586_v12  ;;  %v3807_v35 = vpop.eup %3293  ;;  %vm3819_vm6 = vcmp.lt.f32.partialorder %v639_v30, 0.0004427343 }
 0x102   : > { %v589_v27 = vmin.f32 %v3791_v14, 20.0  ;;  %3307 = vlog2.f32 %v642_v18  ;;  %v646_v54 = vadd.f32 1.0, %v645_v34  ;;  %v648_v60 = vand.u32 2147483647, %v3785_v7 }
 0x103   : > { %v3076_v29 = vpop.f32.mrb[14].mxu0  ;;  %3309 = vpow2.f32 %v608_v16  ;;  %v588_v37 = vmin.f32 %v3794_v17, 20.0  ;;  %v654_v0 = vmul.f32 -0.5, %v3797_v19  ;;  %v660_v1 = vadd.f32 1.0, %v3807_v35 }
 0x104   : > { %v3803_v31 = vadd.f32 %v3076_v29, %v3734_v24  ;;  %v551_v32 = vpop.f32.mrb[15].mxu0  ;;  %3311 = vpow2.f32 %v614_v20  ;;  %v618_v47 = vmul.f32 1.442695, %v589_v27  ;;  %vm3859_vm9 = vcmp.lt.f32.partialorder %v648_v60, 0.0004427343 }
 0x105   : > { %v3811_v38 = vadd.f32 %v3734_v24, %v551_v32  ;;  %3313 = vpow2.f32 %v612_v25  ;;  %v616_v57 = vmul.f32 1.442695, %v588_v37  ;;  %v655_v13 = vadd.f32 1.0, %v654_v0 }
 0x106   : > { %v3296_v40 = vpop.eup %3295  ;;  %v591_v24 = vmin.f32 %v3803_v31, 20.0  ;;  %3315 = vlog2.f32 %v651_v39  ;;  %v663_v18 = vmul.f32 -0.5, %v3807_v35  ;;  %v657_v22 = vand.u32 2147483647, %v3797_v19 }
 0x107   : > { %v3298_v46 = vpop.eup %3297  ;;  %v626_v50 = vmul.f32 0.6931472, %v3296_v40  ;;  %v590_v58 = vmin.f32 %v3811_v38, 20.0  ;;  %3317 = vpow2.f32 %v618_v47  ;;  %v666_v29 = vand.u32 2147483647, %v3807_v35 }
 0x108   : > { %v635_v52 = vmul.f32 0.6931472, %v3298_v46  ;;  %v3824_v56 = vpop.eup %3299  ;;  %3319 = vlog2.f32 %v660_v1  ;;  %v656_v37 = vmul.f32 %v3797_v19, %v655_v13  ;;  %v664_v40 = vadd.f32 1.0, %v663_v18 }
 0x109   : > { %v632_v53 = vsel %vm3814_vm5, %v629_v41, %v626_v50  ;;  %v3830_v61 = vpop.eup %3301  ;;  %v669_v5 = vadd.f32 1.0, %v3824_v56  ;;  %3321 = vpow2.f32 %v616_v57  ;;  %v620_v9 = vmul.f32 1.442695, %v590_v58 }
 0x10a   : > { %v3835_v62 = vsel %vm560_vm4, %v3740_v28, %v632_v53  ;;  %v641_v63 = vsel %vm3819_vm6, %v638_v45, %v635_v52  ;;  %v3841_v3 = vpop.eup %3303  ;;  %v622_v28 = vmul.f32 1.442695, %v591_v24  ;;  %v678_v10 = vadd.f32 1.0, %v3830_v61 }
 0x10b   : > { %3085 = vmatprep.mubr.msk.f32.mxu1 %vm795_vm2, %v3835_v62  ;;  %v3848_v4 = vsel %vm561_vm3, %v3737_v26, %v641_v63  ;;  %v3853_v8 = vpop.eup %3305  ;;  %v647_v26 = vmul.f32 %v3785_v7, %v646_v54  ;;  %3323 = vlog2.f32 %v669_v5  ;;  %v672_v20 = vmul.f32 -0.5, %v3824_v56 }
 0x10c   : > { %3086 = vmatmul.mubr.msk.f32.vlgmr.msra.gmra.mrb[0].mxu1 %vm795_vm2, %v3848_v4  ;;  %v3308_v11 = vpop.eup %3307  ;;  %3325 = vlog2.f32 %v678_v10  ;;  %v681_v7 = vmul.f32 -0.5, %v3830_v61  ;;  %v687_v23 = vadd.f32 1.0, %v3841_v3  ;;  %v675_v30 = vand.u32 2147483647, %v3824_v56 }
 0x10d   : > { %v3863_v15 = vpop.eup %3309  ;;  %v644_v16 = vmul.f32 0.6931472, %v3308_v11  ;;  %3327 = vpow2.f32 %v622_v28  ;;  %v673_v41 = vadd.f32 1.0, %v672_v20  ;;  %vm658_vm13 = vcmp.lt.f32.partialorder %v657_v22, 0.0004427343 }
 0x10e   : > { %v3867_v21 = vpop.eup %3311  ;;  %3329 = vpow2.f32 %v620_v9  ;;  %v696_v44 = vadd.f32 1.0, %v3863_v15  ;;  %v682_v45 = vadd.f32 1.0, %v681_v7  ;;  %v705_v46 = vadd.f32 1.0, %v3853_v8 }
 0x10f   : > { %v3872_v25 = vpop.eup %3313  ;;  %v650_v27 = vsel %vm3859_vm9, %v647_v26, %v644_v16  ;;  %3331 = vlog2.f32 %v687_v23  ;;  %vm3894_vm14 = vcmp.lt.f32.partialorder %v666_v29, 0.0004427343  ;;  %vm3898_vm15 = vcmp.lt.f32.partialorder %v675_v30, 0.0004427343 }
 0x110   : > { %v3316_v32 = vpop.eup %3315  ;;  %v3882_v34 = vsel %vm562_vm8, %v3748_v36, %v650_v27  ;;  %v690_v36 = vmul.f32 -0.5, %v3841_v3  ;;  %3333 = vlog2.f32 %v696_v44  ;;  %v684_v54 = vand.u32 2147483647, %v3830_v61 }
 0x111   : > { %3088 = vmatprep.mubr.msk.f32.mxu1 %vm795_vm2, %v3882_v34  ;;  %v653_v39 = vmul.f32 0.6931472, %v3316_v32  ;;  %v3892_v19 = vpop.eup %3317  ;;  %v693_v57 = vand.u32 2147483647, %v3841_v3  ;;  %3335 = vlog2.f32 %v705_v46  ;;  %v665_v60 = vmul.f32 %v3807_v35, %v664_v40 }
 0x112   : > { %v3320_v24 = vpop.eup %3319  ;;  %v674_v63 = vmul.f32 %v3824_v56, %v673_v41  ;;  %v683_v1 = vmul.f32 %v3830_v61, %v682_v45  ;;  %v691_v28 = vadd.f32 1.0, %v690_v36  ;;  %v699_v5 = vmul.f32 -0.5, %v3863_v15 }
 0x113   : > { %v659_v47 = vsel %vm658_vm13, %v656_v37, %v653_v39  ;;  %v3909_v58 = vpop.eup %3321  ;;  %v662_v53 = vmul.f32 0.6931472, %v3320_v24  ;;  %v723_v9 = vadd.f32 1.0, %v3867_v21  ;;  %v708_v12 = vmul.f32 -0.5, %v3853_v8 }
 0x114   : > { %v3905_v52 = vsel %vm563_vm7, %v3745_v33, %v659_v47  ;;  %v714_v33 = vadd.f32 1.0, %v3872_v25  ;;  %vm3930_vm1 = vcmp.lt.f32.partialorder %v684_v54, 0.0004427343  ;;  %vm3934_vm3 = vcmp.lt.f32.partialorder %v693_v57, 0.0004427343 }
 0x115   : > { %3089 = vmatmul.mubr.msk.f32.gmra.mrb[2].mxu1 %vm795_vm2, %v3905_v52  ;;  %v3324_v0 = vpop.eup %3323  ;;  %v668_v11 = vsel %vm3894_vm14, %v665_v60, %v662_v53  ;;  %vm569_vm4 = vcmp.gt.f32.partialorder %v3770_v55, 20.0  ;;  %v702_v20 = vand.u32 2147483647, %v3863_v15  ;;  %v717_v22 = vmul.f32 -0.5, %v3872_v25 }
 0x116   : > { %v3326_v10 = vpop.eup %3325  ;;  %v671_v26 = vmul.f32 0.6931472, %v3324_v0  ;;  %3337 = vlog2.f32 %v714_v33  ;;  %v3928_v56 = vsel %vm564_vm10, %v3753_v42, %v668_v11  ;;  %v700_v29 = vadd.f32 1.0, %v699_v5 }
 0x117   : > { %v3923_v35 = vpop.eup %3327  ;;  %v680_v61 = vmul.f32 0.6931472, %v3326_v10  ;;  %3091 = vmatprep.mubr.msk.f32.mxu1 %vm795_vm2, %v3928_v56  ;;  %3339 = vlog2.f32 %v723_v9  ;;  %v732_v30 = vadd.f32 1.0, %v3909_v58  ;;  %v692_v39 = vmul.f32 %v3841_v3, %v691_v28 }
 0x118   : > { %v3938_v18 = vpop.eup %3329  ;;  %v677_v42 = vsel %vm3898_vm15, %v674_v63, %v671_v26  ;;  %v709_v40 = vadd.f32 1.0, %v708_v12  ;;  %v726_v41 = vmul.f32 -0.5, %v3867_v21  ;;  %v741_v44 = vadd.f32 1.0, %v3892_v19 }
 0x119   : > { %v3332_v7 = vpop.eup %3331  ;;  %v3950_v23 = vsel %vm565_vm11, %v3756_v43, %v677_v42  ;;  %v686_v27 = vsel %vm3930_vm1, %v683_v1, %v680_v61  ;;  %v711_v43 = vand.u32 2147483647, %v3853_v8  ;;  %3341 = vlog2.f32 %v732_v30 }
 0x11a   : > { %3092 = vmatmul.mubr.msk.f32.gmra.mrb[4].mxu1 %vm795_vm2, %v3950_v23  ;;  %v3960_v32 = vsel %vm566_vm12, %v3763_v49, %v686_v27  ;;  %v689_v37 = vmul.f32 0.6931472, %v3332_v7  ;;  %v3334_v45 = vpop.eup %3333  ;;  %vm568_vm5 = vcmp.gt.f32.partialorder %v3774_v59, 20.0  ;;  %vm3971_vm6 = vcmp.lt.f32.partialorder %v702_v20, 0.0004427343 }
 0x11b   : > { %3094 = vmatprep.mubr.msk.f32.mxu1 %vm795_vm2, %v3960_v32  ;;  %v718_v3 = vadd.f32 1.0, %v717_v22  ;;  %v3336_v46 = vpop.eup %3335  ;;  %v698_v50 = vmul.f32 0.6931472, %v3334_v45  ;;  %v701_v51 = vmul.f32 %v3863_v15, %v700_v29  ;;  %v720_v24 = vand.u32 2147483647, %v3872_v25 }
 0x11c   : > { %v695_v49 = vsel %vm3934_vm3, %v692_v39, %v689_v37  ;;  %v707_v54 = vmul.f32 0.6931472, %v3336_v46  ;;  %v710_v57 = vmul.f32 %v3853_v8, %v709_v40  ;;  %v735_v53 = vmul.f32 -0.5, %v3909_v58 }
 0x11d   : > { %v3978_v47 = vsel %vm567_vm0, %v3760_v48, %v695_v49  ;;  %3343 = vlog2.f32 %v741_v44  ;;  %v704_v60 = vsel %vm3971_vm6, %v701_v51, %v698_v50  ;;  %vm712_vm7 = vcmp.lt.f32.partialorder %v711_v43, 0.0004427343 }
 0x11e   : > { %3095 = vmatmul.mubr.msk.f32.gmra.mrb[6].mxu1 %vm795_vm2, %v3978_v47  ;;  %v727_v48 = vadd.f32 1.0, %v726_v41  ;;  %v750_v63 = vadd.f32 1.0, %v3938_v18  ;;  %v3992_v15 = vsel %vm568_vm5, %v3774_v59, %v704_v60  ;;  %v713_v0 = vsel %vm712_vm7, %v710_v57, %v707_v54  ;;  %v1215_v54 = vld [vmem:[%s5196_s5 + $0x10] sm:$0xff] }
 0x11f   : > { %v719_v1 = vmul.f32 %v3872_v25, %v718_v3  ;;  %v729_v8 = vand.u32 2147483647, %v3867_v21  ;;  %3097 = vmatprep.mubr.msk.f32.mxu1 %vm795_vm2, %v3992_v15  ;;  %v4001_v28 = vsel %vm569_vm4, %v3770_v55, %v713_v0  ;;  %v744_v9 = vmul.f32 -0.5, %v3892_v19 }
 0x120   : > { %v3338_v33 = vpop.eup %3337  ;;  %3345 = vlog2.f32 %v750_v63  ;;  %vm570_vm8 = vcmp.gt.f32.partialorder %v3783_v6, 20.0  ;;  %vm721_vm9 = vcmp.lt.f32.partialorder %v720_v24, 0.0004427343  ;;  %v736_v59 = vadd.f32 1.0, %v735_v53  ;;  %v4069_v53 = vld [vmem:[%s5195_s4] ss:$0 sm:$0xff] }
 0x121   : > { %v716_v5 = vmul.f32 0.6931472, %v3338_v33  ;;  %v3340_v10 = vpop.eup %3339  ;;  %v759_v25 = vadd.f32 1.0, %v3923_v35  ;;  %v728_v12 = vmul.f32 %v3867_v21, %v727_v48  ;;  %v738_v55 = vand.u32 2147483647, %v3909_v58 }
 0x122   : > { %3098 = vmatmul.mubr.msk.f32.gmra.mrb[8].mxu1 %vm795_vm2, %v4001_v28  ;;  %v725_v26 = vmul.f32 0.6931472, %v3340_v10  ;;  %vm730_vm10 = vcmp.lt.f32.partialorder %v729_v8, 0.0004427343  ;;  %v753_v13 = vmul.f32 -0.5, %v3938_v18  ;;  %vm571_vm11 = vcmp.gt.f32.partialorder %v3779_v2, 20.0 }
 0x123   : > { %v722_v11 = vsel %vm721_vm9, %v719_v1, %v716_v5  ;;  %3347 = vlog2.f32 %v759_v25  ;;  %v3342_v16 = vpop.eup %3341  ;;  %v745_v20 = vadd.f32 1.0, %v744_v9  ;;  %v737_v7 = vmul.f32 %v3909_v58, %v736_v59 }
 0x124   : > { %v4011_v61 = vsel %vm570_vm8, %v3783_v6, %v722_v11  ;;  %v731_v42 = vsel %vm730_vm10, %v728_v12, %v725_v26  ;;  %v734_v21 = vmul.f32 0.6931472, %v3342_v16  ;;  %v747_v6 = vand.u32 2147483647, %v3892_v19 }
 0x125   : > { %3100 = vmatprep.mubr.msk.f32.mxu1 %vm795_vm2, %v4011_v61  ;;  %v4018_v22 = vsel %vm571_vm11, %v3779_v2, %v731_v42  ;;  %vm739_vm12 = vcmp.lt.f32.partialorder %v738_v55, 0.0004427343  ;;  %v762_v27 = vmul.f32 -0.5, %v3923_v35  ;;  %vm572_vm13 = vcmp.gt.f32.partialorder %v3794_v17, 20.0 }
 0x126   : > { %3101 = vmatmul.mubr.msk.f32.gmra.mrb[10].mxu1 %vm795_vm2, %v4018_v22  ;;  %v740_v30 = vsel %vm739_vm12, %v737_v7, %v734_v21  ;;  %v754_v37 = vadd.f32 1.0, %v753_v13  ;;  %v746_v40 = vmul.f32 %v3892_v19, %v745_v20  ;;  %v756_v58 = vand.u32 2147483647, %v3938_v18 }
 0x127   : > { %v3344_v29 = vpop.eup %3343  ;;  %v4027_v39 = vsel %vm572_vm13, %v3794_v17, %v740_v30  ;;  %vm748_vm14 = vcmp.lt.f32.partialorder %v747_v6, 0.0004427343  ;;  %vm573_vm15 = vcmp.gt.f32.partialorder %v3791_v14, 20.0  ;;  %v763_v44 = vadd.f32 1.0, %v762_v27 }
 0x128   : > { %v743_v2 = vmul.f32 0.6931472, %v3344_v29  ;;  %3103 = vmatprep.mubr.msk.f32.mxu1 %vm795_vm2, %v4027_v39  ;;  %v755_v17 = vmul.f32 %v3938_v18, %v754_v37  ;;  %v765_v36 = vand.u32 2147483647, %v3923_v35  ;;  %vm757_vm0 = vcmp.lt.f32.partialorder %v756_v58, 0.0004427343 }
 0x129   : > { %vm574_vm1 = vcmp.gt.f32.partialorder %v3811_v38, 20.0  ;;  %vm575_vm4 = vcmp.gt.f32.partialorder %v3803_v31, 20.0 }
 0x12a   : > { %v3346_v43 = vpop.eup %3345  ;;  %v749_v41 = vsel %vm748_vm14, %v746_v40, %v743_v2  ;;  %vm766_vm3 = vcmp.lt.f32.partialorder %v765_v36, 0.0004427343 }
 0x12b   : > { %v4035_v45 = vsel %vm573_vm15, %v3791_v14, %v749_v41  ;;  %v752_v49 = vmul.f32 0.6931472, %v3346_v43  ;;  %v764_v14 = vmul.f32 %v3923_v35, %v763_v44  ;;  %v1214_v35 = vld [vmem:[%s5196_s5 + $0x8] sm:$0xff] }
 0x12c   : > { %3104 = vmatmul.mubr.msk.f32.gmra.mrb[12].mxu1 %vm795_vm2, %v4035_v45 }
 0x12d   : > { %v3348_v19 = vpop.eup %3347  ;;  %v758_v3 = vsel %vm757_vm0, %v755_v17, %v752_v49 }
 0x12e   : > { %v4043_v46 = vsel %vm574_vm1, %v3811_v38, %v758_v3  ;;  %v761_v50 = vmul.f32 0.6931472, %v3348_v19  ;;  %v1213_v38 = vld [vmem:[%s5196_s5] sm:$0xff] }
 0x12f   : > { %3106 = vmatprep.mubr.msk.f32.mxu1 %vm795_vm2, %v4043_v46  ;;  %v3245_v24 = vpack.c.bf16 %v1214_v35, %v1213_v38 }
 0x130   : > { %v767_v18 = vsel %vm766_vm3, %v764_v14, %v761_v50 }
 0x131   : > { %v4050_v51 = vsel %vm575_vm4, %v3803_v31, %v767_v18  ;;  %3246 = vmatprep.subr.bf16.mxu0 %v3245_v24  ;;  %v1216_v31 = vld [vmem:[%s5196_s5 + $0x18] sm:$0xff] }
 0x132   : > { %3107 = vmatmul.mubr.msk.f32.gmra.mrb[14].mxu1 %vm795_vm2, %v4050_v51  ;;  %3248 = vmatpush3.bf16.msra.mxu0 %v3245_v24  ;;  %v3249_v57 = vpack.c.bf16 %v1216_v31, %v1215_v54 }
 0x134   : > { %3250 = vmatprep.subr.bf16.mxu0 %v3249_v57 }
 0x136   : > { %3252 = vmatpush3.bf16.msra.mxu0 %v3249_v57 }
 0x1df   : > { %v3087_v60 = vpop.f32.mrb[0].mxu1 }
 0x1e0   : > { %v4072_v48 = vadd.f32 %v3087_v60, %v4069_v53  ;;  %v910_v63 = vpop.f32.mrb[1].mxu1 }
 0x1e1   : > { %v4075_v33 = vadd.f32 %v4069_v53, %v910_v63 }
 0x1e2   : > { %v1006_v0 = vmin.f32 %v4072_v48, 20.0  ;;  %vm990_vm5 = vcmp.gt.f32.partialorder %v4072_v48, 20.0 }
 0x1e3   : > { %v1005_v1 = vmin.f32 %v4075_v33, 20.0  ;;  %vm989_vm7 = vcmp.gt.f32.partialorder %v4075_v33, 20.0 }
 0x1e4   : > { %v1023_v8 = vmul.f32 1.442695, %v1006_v0 }
 0x1e5   : > { %v1021_v5 = vmul.f32 1.442695, %v1005_v1 }
 0x1e6   : > { %3349 = vpow2.f32 %v1023_v8 }
 0x1e7   : > { %3351 = vpow2.f32 %v1021_v5 }
 0x1e8   : > { %v3090_v9 = vpop.f32.mrb[2].mxu1 }
 0x1e9   : > { %v4080_v10 = vadd.f32 %v3090_v9, %v4069_v53  ;;  %v920_v59 = vpop.f32.mrb[3].mxu1 }
 0x1ea   : > { %v4083_v25 = vadd.f32 %v4069_v53, %v920_v59 }
 0x1eb   : > { %v1008_v11 = vmin.f32 %v4080_v10, 20.0  ;;  %vm992_vm12 = vcmp.gt.f32.partialorder %v4080_v10, 20.0 }
 0x1ec   : > { %v1007_v26 = vmin.f32 %v4083_v25, 20.0  ;;  %vm991_vm9 = vcmp.gt.f32.partialorder %v4083_v25, 20.0 }
 0x1ed   : > { %v1027_v12 = vmul.f32 1.442695, %v1008_v11  ;;  %v3093_v16 = vpop.f32.mrb[4].mxu1 }
 0x1ee   : > { %v1025_v13 = vmul.f32 1.442695, %v1007_v26  ;;  %v930_v21 = vpop.f32.mrb[5].mxu1  ;;  %v4088_v7 = vadd.f32 %v3093_v16, %v4069_v53 }
 0x1ef   : > { %3353 = vpow2.f32 %v1027_v12  ;;  %v4091_v6 = vadd.f32 %v4069_v53, %v930_v21 }
 0x1f0   : > { %v3350_v55 = vpop.eup %3349  ;;  %3355 = vpow2.f32 %v1025_v13  ;;  %v1010_v29 = vmin.f32 %v4088_v7, 20.0  ;;  %vm994_vm0 = vcmp.gt.f32.partialorder %v4088_v7, 20.0 }
 0x1f1   : > { %v3352_v42 = vpop.eup %3351  ;;  %v1062_v20 = vadd.f32 1.0, %v3350_v55  ;;  %v1009_v30 = vmin.f32 %v4091_v6, 20.0  ;;  %v3096_v37 = vpop.f32.mrb[6].mxu1  ;;  %v1065_v44 = vmul.f32 -0.5, %v3350_v55  ;;  %v1068_v31 = vand.u32 2147483647, %v3350_v55 }
 0x1f2   : > { %v1053_v27 = vadd.f32 1.0, %v3352_v42  ;;  %v4096_v2 = vadd.f32 %v3096_v37, %v4069_v53  ;;  %v940_v40 = vpop.f32.mrb[7].mxu1  ;;  %v1031_v58 = vmul.f32 1.442695, %v1010_v29  ;;  %v1056_v36 = vmul.f32 -0.5, %v3352_v42 }
 0x1f3   : > { %3357 = vlog2.f32 %v1062_v20  ;;  %v1029_v43 = vmul.f32 1.442695, %v1009_v30  ;;  %v4099_v41 = vadd.f32 %v4069_v53, %v940_v40  ;;  %v1066_v54 = vadd.f32 1.0, %v1065_v44 }
 0x1f4   : > { %3359 = vlog2.f32 %v1053_v27  ;;  %v1012_v19 = vmin.f32 %v4096_v2, 20.0  ;;  %v1057_v57 = vadd.f32 1.0, %v1056_v36  ;;  %v1059_v59 = vand.u32 2147483647, %v3352_v42 }
 0x1f5   : > { %v1011_v49 = vmin.f32 %v4099_v41, 20.0  ;;  %v3099_v17 = vpop.f32.mrb[8].mxu1  ;;  %3361 = vpow2.f32 %v1029_v43  ;;  %v1067_v20 = vmul.f32 %v3350_v55, %v1066_v54  ;;  %vm4124_vm6 = vcmp.lt.f32.partialorder %v1068_v31, 0.0004427343 }
 0x1f6   : > { %v4104_v3 = vadd.f32 %v3099_v17, %v4069_v53  ;;  %v950_v50 = vpop.f32.mrb[9].mxu1  ;;  %3363 = vpow2.f32 %v1031_v58  ;;  %v1035_v0 = vmul.f32 1.442695, %v1012_v19  ;;  %v1058_v27 = vmul.f32 %v3352_v42, %v1057_v57 }
 0x1f7   : > { %v1033_v14 = vmul.f32 1.442695, %v1011_v49  ;;  %v4107_v18 = vadd.f32 %v4069_v53, %v950_v50  ;;  %vm1060_vm8 = vcmp.lt.f32.partialorder %v1059_v59, 0.0004427343  ;;  %vm993_vm13 = vcmp.gt.f32.partialorder %v4091_v6, 20.0 }
 0x1f8   : > { %v1014_v35 = vmin.f32 %v4104_v3, 20.0  ;;  %vm996_vm1 = vcmp.gt.f32.partialorder %v4096_v2, 20.0  ;;  %vm995_vm3 = vcmp.gt.f32.partialorder %v4099_v41, 20.0 }
 0x1f9   : > { %v4109_v38 = vpop.eup %3353  ;;  %3365 = vpow2.f32 %v1033_v14  ;;  %v1013_v1 = vmin.f32 %v4107_v18, 20.0  ;;  %v3102_v8 = vpop.f32.mrb[10].mxu1 }
 0x1fa   : > { %v4112_v24 = vpop.eup %3355  ;;  %v1080_v60 = vadd.f32 1.0, %v4109_v38  ;;  %v960_v9 = vpop.f32.mrb[11].mxu1  ;;  %v1039_v12 = vmul.f32 1.442695, %v1014_v35  ;;  %v4119_v13 = vadd.f32 %v3102_v8, %v4069_v53  ;;  %v1083_v42 = vmul.f32 -0.5, %v4109_v38 }
 0x1fb   : > { %v1071_v11 = vadd.f32 1.0, %v4112_v24  ;;  %v4122_v16 = vadd.f32 %v4069_v53, %v960_v9  ;;  %v1037_v29 = vmul.f32 1.442695, %v1013_v1  ;;  %v1074_v58 = vmul.f32 -0.5, %v4112_v24 }
 0x1fc   : > { %3367 = vlog2.f32 %v1080_v60  ;;  %v1016_v43 = vmin.f32 %v4119_v13, 20.0  ;;  %v1077_v1 = vand.u32 2147483647, %v4112_v24  ;;  %v1084_v9 = vadd.f32 1.0, %v1083_v42 }
 0x1fd   : > { %v3358_v63 = vpop.eup %3357  ;;  %3369 = vpow2.f32 %v1035_v0  ;;  %v1015_v30 = vmin.f32 %v4122_v16, 20.0  ;;  %v1075_v60 = vadd.f32 1.0, %v1074_v58 }
 0x1fe   : > { %v1064_v5 = vmul.f32 0.6931472, %v3358_v63  ;;  %v3360_v26 = vpop.eup %3359  ;;  %3371 = vlog2.f32 %v1071_v11  ;;  %vm4174_vm10 = vcmp.lt.f32.partialorder %v1077_v1, 0.0004427343  ;;  %v1085_v42 = vmul.f32 %v4109_v38, %v1084_v9 }
 0x1ff   : > { %v1055_v37 = vmul.f32 0.6931472, %v3360_v26  ;;  %v4133_v55 = vpop.eup %3361  ;;  %3373 = vpow2.f32 %v1039_v12  ;;  %v3105_v44 = vpop.f32.mrb[12].mxu1  ;;  %v1041_v36 = vmul.f32 1.442695, %v1015_v30  ;;  %v1076_v58 = vmul.f32 %v4112_v24, %v1075_v60 }
 0x200   : > { %v1070_v40 = vsel %vm4124_vm6, %v1067_v20, %v1064_v5  ;;  %v4137_v17 = vpop.eup %3363  ;;  %v4140_v19 = vadd.f32 %v3105_v44, %v4069_v53  ;;  %v970_v50 = vpop.f32.mrb[13].mxu1  ;;  %v1089_v35 = vadd.f32 1.0, %v4133_v55  ;;  %3375 = vpow2.f32 %v1037_v29 }
 0x201   : > { %v1061_v49 = vsel %vm1060_vm8, %v1058_v27, %v1055_v37  ;;  %v1198_v54 = vsel %vm990_vm5, %v4072_v48, %v1070_v40  ;;  %v4150_v31 = vadd.f32 %v4069_v53, %v970_v50  ;;  %v1098_v48 = vadd.f32 1.0, %v4137_v17 }
 0x202   : > { %v1197_v14 = vsel %vm989_vm7, %v4075_v33, %v1061_v49  ;;  %v1018_v57 = vmin.f32 %v4140_v19, 20.0  ;;  %3377 = vlog2.f32 %v1089_v35  ;;  %v1043_v33 = vmul.f32 1.442695, %v1016_v43 }
 0x203   : > { %3117 = vmatprep.mubr.msk.f32.mxu0 %vm795_vm2, %v1197_v14  ;;  %v4155_v63 = vpop.eup %3365  ;;  %v1017_v0 = vmin.f32 %v4150_v31, 20.0  ;;  %3379 = vpow2.f32 %v1041_v36  ;;  %v1092_v59 = vmul.f32 -0.5, %v4133_v55  ;;  %v1086_v12 = vand.u32 2147483647, %v4109_v38 }
 0x204   : > { %3118 = vmatmul.mubr.msk.f32.vlgmr.msra.gmra.mrb[16].mxu0 %vm795_vm2, %v1198_v54  ;;  %v1047_v5 = vmul.f32 1.442695, %v1018_v57  ;;  %3381 = vlog2.f32 %v1098_v48  ;;  %v1101_v29 = vmul.f32 -0.5, %v4137_v17  ;;  %v1107_v30 = vadd.f32 1.0, %v4155_v63 }
 0x205   : > { %v1045_v11 = vmul.f32 1.442695, %v1017_v0  ;;  %v3108_v26 = vpop.f32.mrb[14].mxu1  ;;  %3383 = vpow2.f32 %v1043_v33  ;;  %v1093_v36 = vadd.f32 1.0, %v1092_v59  ;;  %vm4183_vm11 = vcmp.lt.f32.partialorder %v1086_v12, 0.0004427343 }
 0x206   : > { %v3368_v8 = vpop.eup %3367  ;;  %v4164_v20 = vadd.f32 %v3108_v26, %v4069_v53  ;;  %v980_v21 = vpop.f32.mrb[15].mxu1  ;;  %3385 = vpow2.f32 %v1047_v5  ;;  %v1095_v54 = vand.u32 2147483647, %v4133_v55  ;;  %v1102_v57 = vadd.f32 1.0, %v1101_v29 }
 0x207   : > { %v1082_v27 = vmul.f32 0.6931472, %v3368_v8  ;;  %v4168_v37 = vpop.eup %3369  ;;  %v4171_v40 = vadd.f32 %v4069_v53, %v980_v21  ;;  %3387 = vpow2.f32 %v1045_v11  ;;  %v1094_v5 = vmul.f32 %v4133_v55, %v1093_v36 }
 0x208   : > { %v3372_v44 = vpop.eup %3371  ;;  %v1020_v49 = vmin.f32 %v4164_v20, 20.0  ;;  %3389 = vlog2.f32 %v1107_v30  ;;  %v1116_v1 = vadd.f32 1.0, %v4168_v37  ;;  %v1104_v9 = vand.u32 2147483647, %v4137_v17 }
 0x209   : > { %v4180_v50 = vpop.eup %3373  ;;  %v1019_v14 = vmin.f32 %v4171_v40, 20.0  ;;  %v1073_v53 = vmul.f32 0.6931472, %v3372_v44  ;;  %v1088_v24 = vsel %vm4183_vm11, %v1085_v42, %v1082_v27  ;;  %v1110_v26 = vmul.f32 -0.5, %v4155_v63 }
 0x20a   : > { %v4190_v60 = vpop.eup %3375  ;;  %v1051_v38 = vmul.f32 1.442695, %v1020_v49  ;;  %v1200_v59 = vsel %vm992_vm12, %v4080_v10, %v1088_v24  ;;  %vm1096_vm14 = vcmp.lt.f32.partialorder %v1095_v54, 0.0004427343  ;;  %v1103_v27 = vmul.f32 %v4137_v17, %v1102_v57 }
 0x20b   : > { %v1049_v33 = vmul.f32 1.442695, %v1019_v14  ;;  %v1079_v0 = vsel %vm4174_vm10, %v1076_v58, %v1073_v53  ;;  %v1113_v10 = vand.u32 2147483647, %v4155_v63  ;;  %v1119_v58 = vmul.f32 -0.5, %v4168_v37 }
 0x20c   : > { %v3378_v48 = vpop.eup %3377  ;;  %v1199_v8 = vsel %vm991_vm9, %v4083_v25, %v1079_v0  ;;  %v1125_v25 = vadd.f32 1.0, %v4190_v60  ;;  %vm1105_vm15 = vcmp.lt.f32.partialorder %v1104_v9, 0.0004427343  ;;  %v1111_v44 = vadd.f32 1.0, %v1110_v26 }
 0x20d   : > { %3391 = vpow2.f32 %v1049_v33  ;;  %3120 = vmatprep.mubr.msk.f32.mxu0 %vm795_vm2, %v1199_v8  ;;  %v1091_v11 = vmul.f32 0.6931472, %v3378_v48  ;;  %v4204_v12 = vpop.eup %3379  ;;  %v1134_v49 = vadd.f32 1.0, %v4180_v50  ;;  %v1128_v36 = vmul.f32 -0.5, %v4190_v60 }
 0x20e   : > { %3121 = vmatmul.mubr.msk.f32.gmra.mrb[18].mxu0 %vm795_vm2, %v1200_v59  ;;  %3393 = vlog2.f32 %v1116_v1  ;;  %v3382_v55 = vpop.eup %3381  ;;  %v1122_v35 = vand.u32 2147483647, %v4168_v37  ;;  %vm4229_vm4 = vcmp.lt.f32.partialorder %v1113_v10, 0.0004427343  ;;  %v1120_v57 = vadd.f32 1.0, %v1119_v58 }
 0x20f   : > { %3395 = vpow2.f32 %v1051_v38  ;;  %v1097_v21 = vsel %vm1096_vm14, %v1094_v5, %v1091_v11  ;;  %v1100_v30 = vmul.f32 0.6931472, %v3382_v55  ;;  %v4213_v43 = vpop.eup %3383  ;;  %v1112_v0 = vmul.f32 %v4155_v63, %v1111_v44 }
 0x210   : > { %v1201_v29 = vsel %vm993_vm13, %v4091_v6, %v1097_v21  ;;  %3397 = vlog2.f32 %v1125_v25  ;;  %v4217_v42 = vpop.eup %3385  ;;  %v1143_v6 = vadd.f32 1.0, %v4204_v12  ;;  %v1152_v38 = vadd.f32 1.0, %v4213_v43 }
 0x211   : > { %3123 = vmatprep.mubr.msk.f32.mxu0 %vm795_vm2, %v1201_v29  ;;  %v1106_v17 = vsel %vm1105_vm15, %v1103_v27, %v1100_v30  ;;  %v4222_v14 = vpop.eup %3387  ;;  %3399 = vlog2.f32 %v1134_v49  ;;  %v1131_v1 = vand.u32 2147483647, %v4190_v60  ;;  %v1129_v48 = vadd.f32 1.0, %v1128_v36 }
 0x212   : > { %v1202_v53 = vsel %vm994_vm0, %v4088_v7, %v1106_v17  ;;  %v3390_v24 = vpop.eup %3389  ;;  %3401 = vlog2.f32 %v1143_v6  ;;  %v1137_v7 = vmul.f32 -0.5, %v4180_v50  ;;  %v1146_v8 = vmul.f32 -0.5, %v4204_v12 }
 0x213   : > { %3124 = vmatmul.mubr.msk.f32.gmra.mrb[20].mxu0 %vm795_vm2, %v1202_v53  ;;  %v1109_v33 = vmul.f32 0.6931472, %v3390_v24  ;;  %3403 = vlog2.f32 %v1152_v38  ;;  %v1161_v5 = vadd.f32 1.0, %v4222_v14  ;;  %vm997_vm5 = vcmp.gt.f32.partialorder %v4107_v18, 20.0 }
 0x214   : > { %vm4244_vm6 = vcmp.lt.f32.partialorder %v1122_v35, 0.0004427343  ;;  %v1140_v63 = vand.u32 2147483647, %v4180_v50  ;;  %vm998_vm7 = vcmp.gt.f32.partialorder %v4104_v3, 20.0  ;;  %v1155_v55 = vmul.f32 -0.5, %v4213_v43 }
 0x215   : > { %v1115_v59 = vsel %vm4229_vm4, %v1112_v0, %v1109_v33  ;;  %3405 = vlog2.f32 %v1161_v5  ;;  %v1170_v21 = vadd.f32 1.0, %v4217_v42  ;;  %vm999_vm8 = vcmp.gt.f32.partialorder %v4122_v16, 20.0 }
 0x216   : > { %v1203_v25 = vsel %vm995_vm3, %v4099_v41, %v1115_v59  ;;  %v1121_v29 = vmul.f32 %v4168_v37, %v1120_v57  ;;  %vm4260_vm9 = vcmp.lt.f32.partialorder %v1131_v1, 0.0004427343  ;;  %v1138_v58 = vadd.f32 1.0, %v1137_v7 }
 0x217   : > { %v4239_v9 = vpop.eup %3391  ;;  %3126 = vmatprep.mubr.msk.f32.mxu0 %vm795_vm2, %v1203_v25  ;;  %v1130_v44 = vmul.f32 %v4190_v60, %v1129_v48  ;;  %v1147_v49 = vadd.f32 1.0, %v1146_v8  ;;  %3407 = vlog2.f32 %v1170_v21  ;;  %vm4268_vm10 = vcmp.lt.f32.partialorder %v1140_v63, 0.0004427343 }
 0x218   : > { %v3394_v26 = vpop.eup %3393  ;;  %v1179_v17 = vadd.f32 1.0, %v4239_v9  ;;  %v1164_v37 = vmul.f32 -0.5, %v4222_v14  ;;  %v1149_v60 = vand.u32 2147483647, %v4204_v12  ;;  %v1156_v24 = vadd.f32 1.0, %v1155_v55 }
 0x219   : > { %v4255_v27 = vpop.eup %3395  ;;  %v1118_v10 = vmul.f32 0.6931472, %v3394_v26  ;;  %v1139_v38 = vmul.f32 %v4180_v50, %v1138_v58  ;;  %v1173_v33 = vmul.f32 -0.5, %v4217_v42  ;;  %v1148_v48 = vmul.f32 %v4204_v12, %v1147_v49 }
 0x21a   : > { %v3398_v41 = vpop.eup %3397  ;;  %3409 = vlog2.f32 %v1179_v17  ;;  %v1188_v0 = vadd.f32 1.0, %v4255_v27  ;;  %v1158_v8 = vand.u32 2147483647, %v4213_v43  ;;  %v1165_v59 = vadd.f32 1.0, %v1164_v37 }
 0x21b   : > { %v1124_v36 = vsel %vm4244_vm6, %v1121_v29, %v1118_v10  ;;  %v1127_v6 = vmul.f32 0.6931472, %v3398_v41  ;;  %v3400_v54 = vpop.eup %3399  ;;  %v1182_v50 = vmul.f32 -0.5, %v4239_v9  ;;  %vm1150_vm11 = vcmp.lt.f32.partialorder %v1149_v60, 0.0004427343 }
 0x21c   : > { %v1204_v35 = vsel %vm996_vm1, %v4096_v2, %v1124_v36  ;;  %v3402_v1 = vpop.eup %3401  ;;  %v1136_v7 = vmul.f32 0.6931472, %v3400_v54  ;;  %3411 = vlog2.f32 %v1188_v0  ;;  %v1157_v26 = vmul.f32 %v4213_v43, %v1156_v24 }
 0x21d   : > { %3127 = vmatmul.mubr.msk.f32.gmra.mrb[22].mxu0 %vm795_vm2, %v1204_v35  ;;  %v1133_v57 = vsel %vm4260_vm9, %v1130_v44, %v1127_v6  ;;  %v1145_v5 = vmul.f32 0.6931472, %v3402_v1  ;;  %v3404_v11 = vpop.eup %3403  ;;  %v1174_v21 = vadd.f32 1.0, %v1173_v33  ;;  %vm1159_vm12 = vcmp.lt.f32.partialorder %v1158_v8, 0.0004427343 }
 0x21e   : > { %v1205_v2 = vsel %vm997_vm5, %v4107_v18, %v1133_v57  ;;  %v1142_v63 = vsel %vm4268_vm10, %v1139_v38, %v1136_v7  ;;  %v1167_v18 = vand.u32 2147483647, %v4222_v14  ;;  %v1154_v55 = vmul.f32 0.6931472, %v3404_v11 }
 0x21f   : > { %3129 = vmatprep.mubr.msk.f32.mxu0 %vm795_vm2, %v1205_v2  ;;  %v1206_v12 = vsel %vm998_vm7, %v4104_v3, %v1142_v63  ;;  %v1151_v25 = vsel %vm1150_vm11, %v1148_v48, %v1145_v5  ;;  %v3406_v10 = vpop.eup %3405  ;;  %v1176_v30 = vand.u32 2147483647, %v4217_v42  ;;  %v1191_v43 = vmul.f32 -0.5, %v4255_v27  ;;  %v4340_v48 = vld [vmem:[%s5197_s6] ss:$0 sm:$0xff] }
 0x220   : > { %v1207_v29 = vsel %vm999_vm8, %v4122_v16, %v1151_v25  ;;  %v1160_v58 = vsel %vm1159_vm12, %v1157_v26, %v1154_v55  ;;  %v1163_v41 = vmul.f32 0.6931472, %v3406_v10  ;;  %v1166_v3 = vmul.f32 %v4222_v14, %v1165_v59 }
 0x221   : > { %3130 = vmatmul.mubr.msk.f32.gmra.mrb[24].mxu0 %vm795_vm2, %v1206_v12  ;;  %v1183_v44 = vadd.f32 1.0, %v1182_v50  ;;  %v3408_v49 = vpop.eup %3407  ;;  %vm1000_vm13 = vcmp.gt.f32.partialorder %v4119_v13, 20.0  ;;  %vm1001_vm14 = vcmp.gt.f32.partialorder %v4150_v31, 20.0  ;;  %vm1168_vm15 = vcmp.lt.f32.partialorder %v1167_v18, 0.0004427343 }
 0x222   : > { %3132 = vmatprep.mubr.msk.f32.mxu0 %vm795_vm2, %v1207_v29  ;;  %v1185_v16 = vand.u32 2147483647, %v4239_v9  ;;  %v1208_v17 = vsel %vm1000_vm13, %v4119_v13, %v1160_v58  ;;  %v1169_v36 = vsel %vm1168_vm15, %v1166_v3, %v1163_v41  ;;  %v1172_v6 = vmul.f32 0.6931472, %v3408_v49 }
 0x223   : > { %v1175_v53 = vmul.f32 %v4217_v42, %v1174_v21  ;;  %v1209_v14 = vsel %vm1001_vm14, %v4150_v31, %v1169_v36  ;;  %vm1177_vm0 = vcmp.lt.f32.partialorder %v1176_v30, 0.0004427343  ;;  %v1192_v35 = vadd.f32 1.0, %v1191_v43 }
 0x224   : > { %v3410_v37 = vpop.eup %3409  ;;  %v1184_v54 = vmul.f32 %v4239_v9, %v1183_v44  ;;  %v1194_v57 = vand.u32 2147483647, %v4255_v27  ;;  %vm1002_vm1 = vcmp.gt.f32.partialorder %v4140_v19, 20.0  ;;  %vm1186_vm3 = vcmp.lt.f32.partialorder %v1185_v16, 0.0004427343 }
 0x225   : > { %3133 = vmatmul.mubr.msk.f32.gmra.mrb[26].mxu0 %vm795_vm2, %v1208_v17  ;;  %v1178_v60 = vsel %vm1177_vm0, %v1175_v53, %v1172_v6  ;;  %v1181_v24 = vmul.f32 0.6931472, %v3410_v37  ;;  %vm1003_vm4 = vcmp.gt.f32.partialorder %v4171_v40, 20.0  ;;  %v1193_v0 = vmul.f32 %v4255_v27, %v1192_v35  ;;  %v2873_v27 = vld [vmem:[%s5194_s3 + $0x30] sm:$0xff] }
 0x226   : > { %3135 = vmatprep.mubr.msk.f32.mxu0 %vm795_vm2, %v1209_v14  ;;  %v3412_v13 = vpop.eup %3411  ;;  %v1210_v42 = vsel %vm1002_vm1, %v4140_v19, %v1178_v60  ;;  %vm1195_vm5 = vcmp.lt.f32.partialorder %v1194_v57, 0.0004427343  ;;  %vm1004_vm6 = vcmp.gt.f32.partialorder %v4164_v20, 20.0  ;;  %v2871_v19 = vld [vmem:[%s5194_s3 + $0x20] sm:$0xff] }
 0x227   : > { %v1187_v38 = vsel %vm1186_vm3, %v1184_v54, %v1181_v24  ;;  %v1190_v33 = vmul.f32 0.6931472, %v3412_v13 }
 0x228   : > { %v1211_v31 = vsel %vm1003_vm4, %v4171_v40, %v1187_v38  ;;  %v2872_v40 = vld [vmem:[%s5194_s3 + $0x28] sm:$0xff] }
 0x229   : > { %3136 = vmatmul.mubr.msk.f32.gmra.mrb[28].mxu0 %vm795_vm2, %v1210_v42  ;;  %v1196_v9 = vsel %vm1195_vm5, %v1193_v0, %v1190_v33  ;;  %v3253_v2 = vpack.c.bf16 %v2872_v40, %v2871_v19 }
 0x22a   : > { %3138 = vmatprep.mubr.msk.f32.mxu0 %vm795_vm2, %v1211_v31  ;;  %v1212_v1 = vsel %vm1004_vm6, %v4164_v20, %v1196_v9  ;;  %v2874_v20 = vld [vmem:[%s5194_s3 + $0x38] sm:$0xff] }
 0x22b   : > { %3254 = vmatprep.subr.bf16.mxu1 %v3253_v2  ;;  %v3257_v7 = vpack.c.bf16 %v2874_v20, %v2873_v27 }
 0x22c   : > { %3256 = vmatpush3.bf16.msra.mxu1 %v3253_v2 }
 0x22d   : > { %3139 = vmatmul.mubr.msk.f32.gmra.mrb[30].mxu0 %vm795_vm2, %v1212_v1  ;;  %3258 = vmatprep.subr.bf16.mxu1 %v3257_v7 }
 0x230   : > { %3260 = vmatpush3.bf16.msra.mxu1 %v3257_v7 }
 0x2d7   : > { %v3119_v8 = vpop.f32.mrb[16].mxu0 }
 0x2d8   : > { %v1344_v5 = vadd.f32 %v3119_v8, %v4340_v48  ;;  %v1338_v59 = vpop.f32.mrb[17].mxu0 }
 0x2d9   : > { %v1339_v50 = vadd.f32 %v4340_v48, %v1338_v59 }
 0x2da   : > { %v4345_v11 = vadd.f32 %v1344_v5, %v3848_v4 }
 0x2db   : > { %v4348_v63 = vadd.f32 %v1339_v50, %v3835_v62 }
 0x2dc   : > { %v1450_v26 = vmin.f32 %v4345_v11, 20.0  ;;  %vm1434_vm7 = vcmp.gt.f32.partialorder %v4345_v11, 20.0 }
 0x2dd   : > { %v1449_v18 = vmin.f32 %v4348_v63, 20.0  ;;  %vm1433_vm8 = vcmp.gt.f32.partialorder %v4348_v63, 20.0 }
 0x2de   : > { %v1467_v12 = vmul.f32 1.442695, %v1450_v26 }
 0x2df   : > { %v1465_v25 = vmul.f32 1.442695, %v1449_v18 }
 0x2e0   : > { %3413 = vpow2.f32 %v1467_v12 }
 0x2e1   : > { %3415 = vpow2.f32 %v1465_v25  ;;  %v3122_v55 = vpop.f32.mrb[18].mxu0 }
 0x2e2   : > { %v1354_v21 = vadd.f32 %v3122_v55, %v4340_v48  ;;  %v1348_v10 = vpop.f32.mrb[19].mxu0 }
 0x2e3   : > { %v1349_v29 = vadd.f32 %v4340_v48, %v1348_v10 }
 0x2e4   : > { %v4355_v4 = vadd.f32 %v1354_v21, %v3905_v52 }
 0x2e5   : > { %v4358_v62 = vadd.f32 %v1349_v29, %v3882_v34 }
 0x2e6   : > { %v1452_v30 = vmin.f32 %v4355_v4, 20.0  ;;  %v3125_v58 = vpop.f32.mrb[20].mxu0  ;;  %vm1436_vm12 = vcmp.gt.f32.partialorder %v4355_v4, 20.0 }
 0x2e7   : > { %v1451_v43 = vmin.f32 %v4358_v62, 20.0  ;;  %v1364_v44 = vadd.f32 %v3125_v58, %v4340_v48  ;;  %v1358_v49 = vpop.f32.mrb[21].mxu0  ;;  %vm1435_vm11 = vcmp.gt.f32.partialorder %v4358_v62, 20.0 }
 0x2e8   : > { %v1471_v3 = vmul.f32 1.442695, %v1452_v30  ;;  %v1359_v34 = vadd.f32 %v4340_v48, %v1358_v49 }
 0x2e9   : > { %v1469_v36 = vmul.f32 1.442695, %v1451_v43  ;;  %v4364_v52 = vadd.f32 %v1364_v44, %v3950_v23 }
 0x2ea   : > { %v3414_v41 = vpop.eup %3413  ;;  %3417 = vpow2.f32 %v1471_v3  ;;  %v4368_v53 = vadd.f32 %v1359_v34, %v3928_v56 }
 0x2eb   : > { %v3416_v16 = vpop.eup %3415  ;;  %v1506_v17 = vadd.f32 1.0, %v3414_v41  ;;  %v1454_v37 = vmin.f32 %v4364_v52, 20.0  ;;  %v1509_v35 = vmul.f32 -0.5, %v3414_v41  ;;  %v1512_v42 = vand.u32 2147483647, %v3414_v41 }
 0x2ec   : > { %v1497_v6 = vadd.f32 1.0, %v3416_v16  ;;  %v1453_v14 = vmin.f32 %v4368_v53, 20.0  ;;  %v1500_v54 = vmul.f32 -0.5, %v3416_v16  ;;  %v1503_v33 = vand.u32 2147483647, %v3416_v16 }
 0x2ed   : > { %3419 = vlog2.f32 %v1506_v17  ;;  %v1475_v57 = vmul.f32 1.442695, %v1454_v37  ;;  %v1510_v31 = vadd.f32 1.0, %v1509_v35  ;;  %vm4387_vm9 = vcmp.lt.f32.partialorder %v1512_v42, 0.0004427343 }
 0x2ee   : > { %3421 = vpow2.f32 %v1469_v36  ;;  %v1473_v60 = vmul.f32 1.442695, %v1453_v14  ;;  %v1501_v1 = vadd.f32 1.0, %v1500_v54  ;;  %vm4394_vm10 = vcmp.lt.f32.partialorder %v1503_v33, 0.0004427343 }
 0x2ef   : > { %3423 = vlog2.f32 %v1497_v6  ;;  %v1511_v59 = vmul.f32 %v3414_v41, %v1510_v31  ;;  %vm1437_vm15 = vcmp.gt.f32.partialorder %v4368_v53, 20.0  ;;  %vm1438_vm3 = vcmp.gt.f32.partialorder %v4364_v52, 20.0 }
 0x2f0   : > { %v3128_v24 = vpop.f32.mrb[22].mxu0  ;;  %3425 = vpow2.f32 %v1473_v60  ;;  %v1502_v21 = vmul.f32 %v3416_v16, %v1501_v1 }
 0x2f1   : > { %v1374_v23 = vadd.f32 %v3128_v24, %v4340_v48  ;;  %v1368_v13 = vpop.f32.mrb[23].mxu0  ;;  %3427 = vpow2.f32 %v1475_v57 }
 0x2f2   : > { %v1369_v38 = vadd.f32 %v4340_v48, %v1368_v13 }
 0x2f3   : > { %v4375_v56 = vadd.f32 %v1374_v23, %v3978_v47 }
 0x2f4   : > { %v4377_v0 = vpop.eup %3417  ;;  %v4380_v9 = vadd.f32 %v1369_v38, %v3960_v32  ;;  %v3131_v2 = vpop.f32.mrb[24].mxu0 }
 0x2f5   : > { %v1456_v40 = vmin.f32 %v4375_v56, 20.0  ;;  %v1384_v7 = vadd.f32 %v3131_v2, %v4340_v48  ;;  %v1378_v8 = vpop.f32.mrb[25].mxu0  ;;  %v1524_v58 = vadd.f32 1.0, %v4377_v0  ;;  %v1527_v35 = vmul.f32 -0.5, %v4377_v0 }
 0x2f6   : > { %v1455_v32 = vmin.f32 %v4380_v9, 20.0  ;;  %v1379_v50 = vadd.f32 %v4340_v48, %v1378_v8  ;;  %v1530_v8 = vand.u32 2147483647, %v4377_v0  ;;  %vm1439_vm5 = vcmp.gt.f32.partialorder %v4380_v9, 20.0 }
 0x2f7   : > { %v3420_v19 = vpop.eup %3419  ;;  %v4400_v25 = vadd.f32 %v1384_v7, %v4001_v28  ;;  %v1479_v29 = vmul.f32 1.442695, %v1456_v40  ;;  %vm1440_vm6 = vcmp.gt.f32.partialorder %v4375_v56, 20.0 }
 0x2f8   : > { %v4385_v27 = vpop.eup %3421  ;;  %v1508_v47 = vmul.f32 0.6931472, %v3420_v19  ;;  %v1477_v12 = vmul.f32 1.442695, %v1455_v32  ;;  %v4405_v30 = vadd.f32 %v1379_v50, %v3992_v15  ;;  %v3134_v43 = vpop.f32.mrb[26].mxu0 }
 0x2f9   : > { %v3424_v5 = vpop.eup %3423  ;;  %v1515_v18 = vadd.f32 1.0, %v4385_v27  ;;  %v1458_v41 = vmin.f32 %v4400_v25, 20.0  ;;  %v1394_v3 = vadd.f32 %v3134_v43, %v4340_v48  ;;  %v1388_v44 = vpop.f32.mrb[27].mxu0  ;;  %v1518_v34 = vmul.f32 -0.5, %v4385_v27 }
 0x2fa   : > { %v1499_v55 = vmul.f32 0.6931472, %v3424_v5  ;;  %v1514_v10 = vsel %vm4387_vm9, %v1511_v59, %v1508_v47  ;;  %3429 = vpow2.f32 %v1477_v12  ;;  %v1457_v49 = vmin.f32 %v4405_v30, 20.0  ;;  %v4430_v6 = vpop.eup %3425 }
 0x2fb   : > { %v1389_v16 = vadd.f32 %v4340_v48, %v1388_v44  ;;  %3431 = vlog2.f32 %v1515_v18  ;;  %v4422_v17 = vsel %vm1434_vm7, %v4345_v11, %v1514_v10  ;;  %v4425_v36 = vadd.f32 %v1394_v3, %v4018_v22  ;;  %v4439_v60 = vpop.eup %3427 }
 0x2fc   : > { %v1505_v28 = vsel %vm4394_vm10, %v1502_v21, %v1499_v55  ;;  %v1481_v37 = vmul.f32 1.442695, %v1457_v49  ;;  %v3137_v14 = vpop.f32.mrb[28].mxu0  ;;  %3433 = vlog2.f32 %v1524_v58  ;;  %v1483_v24 = vmul.f32 1.442695, %v1458_v41 }
 0x2fd   : > { %v4417_v15 = vsel %vm1433_vm8, %v4348_v63, %v1505_v28  ;;  %v4433_v63 = vadd.f32 %v1389_v16, %v4011_v61  ;;  %v1404_v11 = vadd.f32 %v3137_v14, %v4340_v48  ;;  %v1398_v22 = vpop.f32.mrb[29].mxu0  ;;  %3435 = vpow2.f32 %v1479_v29 }
 0x2fe   : > { %3149 = vmatprep.mubr.msk.f32.mxu1 %vm795_vm2, %v4417_v15  ;;  %v1399_v57 = vadd.f32 %v4340_v48, %v1398_v22  ;;  %3437 = vpow2.f32 %v1481_v37  ;;  %v1460_v61 = vmin.f32 %v4425_v36, 20.0  ;;  %v1519_v23 = vadd.f32 1.0, %v1518_v34 }
 0x2ff   : > { %3150 = vmatmul.mubr.msk.f32.vlgmr.msra.gmra.mrb[16].mxu1 %vm795_vm2, %v4422_v17  ;;  %v1459_v54 = vmin.f32 %v4433_v63, 20.0  ;;  %v1533_v13 = vadd.f32 1.0, %v4430_v6  ;;  %v4446_v42 = vadd.f32 %v1404_v11, %v4035_v45  ;;  %v1521_v33 = vand.u32 2147483647, %v4385_v27 }
 0x300   : > { %v4449_v38 = vadd.f32 %v1399_v57, %v4027_v39  ;;  %v3140_v31 = vpop.f32.mrb[30].mxu0  ;;  %v1542_v2 = vadd.f32 1.0, %v4439_v60  ;;  %3439 = vpow2.f32 %v1483_v24  ;;  %v1528_v39 = vadd.f32 1.0, %v1527_v35 }
 0x301   : > { %v1485_v1 = vmul.f32 1.442695, %v1459_v54  ;;  %v1414_v19 = vadd.f32 %v3140_v31, %v4340_v48  ;;  %v1408_v40 = vpop.f32.mrb[31].mxu0  ;;  %v1487_v32 = vmul.f32 1.442695, %v1460_v61  ;;  %v1520_v7 = vmul.f32 %v4385_v27, %v1519_v23 }
 0x302   : > { %v1461_v45 = vmin.f32 %v4449_v38, 20.0  ;;  %v1409_v47 = vadd.f32 %v4340_v48, %v1408_v40  ;;  %3441 = vlog2.f32 %v1533_v13  ;;  %v1462_v59 = vmin.f32 %v4446_v42, 20.0 }
 0x303   : > { %vm4466_vm13 = vcmp.lt.f32.partialorder %v1521_v33, 0.0004427343  ;;  %3443 = vlog2.f32 %v1542_v2  ;;  %v4471_v48 = vadd.f32 %v1414_v19, %v4050_v51  ;;  %v1536_v27 = vmul.f32 -0.5, %v4430_v6 }
 0x304   : > { %v4458_v20 = vpop.eup %3429  ;;  %v4464_v50 = vadd.f32 %v1409_v47, %v4043_v46  ;;  %3445 = vpow2.f32 %v1485_v1  ;;  %v1489_v55 = vmul.f32 1.442695, %v1461_v45  ;;  %v1529_v21 = vmul.f32 %v4377_v0, %v1528_v39 }
 0x305   : > { %v3432_v5 = vpop.eup %3431  ;;  %v1545_v10 = vmul.f32 -0.5, %v4439_v60  ;;  %v1551_v46 = vadd.f32 1.0, %v4458_v20  ;;  %3447 = vpow2.f32 %v1487_v32  ;;  %vm1531_vm14 = vcmp.lt.f32.partialorder %v1530_v8, 0.0004427343 }
 0x306   : > { %v1517_v18 = vmul.f32 0.6931472, %v3432_v5  ;;  %v3434_v12 = vpop.eup %3433  ;;  %v1491_v51 = vmul.f32 1.442695, %v1462_v59  ;;  %v1463_v41 = vmin.f32 %v4464_v50, 20.0  ;;  %v1464_v44 = vmin.f32 %v4471_v48, 20.0 }
 0x307   : > { %v1526_v43 = vmul.f32 0.6931472, %v3434_v12  ;;  %v4479_v58 = vpop.eup %3435  ;;  %3449 = vlog2.f32 %v1551_v46  ;;  %v1537_v49 = vadd.f32 1.0, %v1536_v27  ;;  %v1539_v16 = vand.u32 2147483647, %v4430_v6 }
 0x308   : > { %v1523_v29 = vsel %vm4466_vm13, %v1520_v7, %v1517_v18  ;;  %v4487_v0 = vpop.eup %3437  ;;  %3451 = vpow2.f32 %v1489_v55  ;;  %v1548_v37 = vand.u32 2147483647, %v4439_v60  ;;  %v1554_v14 = vmul.f32 -0.5, %v4458_v20 }
 0x309   : > { %v4485_v3 = vsel %vm1435_vm11, %v4358_v62, %v1523_v29  ;;  %v1532_v28 = vsel %vm1531_vm14, %v1529_v21, %v1526_v43  ;;  %v1546_v62 = vadd.f32 1.0, %v1545_v10  ;;  %v1560_v11 = vadd.f32 1.0, %v4479_v58 }
 0x30a   : > { %3152 = vmatprep.mubr.msk.f32.mxu1 %vm795_vm2, %v4485_v3  ;;  %v4496_v34 = vsel %vm1436_vm12, %v4355_v4, %v1532_v28  ;;  %v4503_v22 = vpop.eup %3439  ;;  %3453 = vpow2.f32 %v1491_v51  ;;  %v1493_v35 = vmul.f32 1.442695, %v1463_v41  ;;  %v1569_v24 = vadd.f32 1.0, %v4487_v0 }
 0x30b   : > { %3153 = vmatmul.mubr.msk.f32.gmra.mrb[18].mxu1 %vm795_vm2, %v4496_v34  ;;  %v1495_v54 = vmul.f32 1.442695, %v1464_v44  ;;  %v1538_v57 = vmul.f32 %v4430_v6, %v1537_v49  ;;  %vm4508_vm0 = vcmp.lt.f32.partialorder %v1539_v16, 0.0004427343  ;;  %3455 = vlog2.f32 %v1560_v11 }
 0x30c   : > { %v3442_v4 = vpop.eup %3441  ;;  %v1547_v31 = vmul.f32 %v4439_v60, %v1546_v62  ;;  %vm4513_vm1 = vcmp.lt.f32.partialorder %v1548_v37, 0.0004427343  ;;  %3457 = vlog2.f32 %v1569_v24  ;;  %v1555_v40 = vadd.f32 1.0, %v1554_v14 }
 0x30d   : > { %v3444_v23 = vpop.eup %3443  ;;  %v1535_v13 = vmul.f32 0.6931472, %v3442_v4  ;;  %v1557_v6 = vand.u32 2147483647, %v4458_v20  ;;  %v1578_v2 = vadd.f32 1.0, %v4503_v22  ;;  %3459 = vpow2.f32 %v1493_v35 }
 0x30e   : > { %v4517_v1 = vpop.eup %3445  ;;  %v1544_v19 = vmul.f32 0.6931472, %v3444_v23  ;;  %v1563_v47 = vmul.f32 -0.5, %v4479_v58  ;;  %v1572_v60 = vmul.f32 -0.5, %v4487_v0  ;;  %v1581_v59 = vmul.f32 -0.5, %v4503_v22 }
 0x30f   : > { %v1541_v45 = vsel %vm4508_vm0, %v1538_v57, %v1535_v13  ;;  %v4525_v39 = vpop.eup %3447  ;;  %3461 = vlog2.f32 %v1578_v2  ;;  %v1587_v26 = vadd.f32 1.0, %v4517_v1  ;;  %v1556_v18 = vmul.f32 %v4458_v20, %v1555_v40 }
 0x310   : > { %v4530_v32 = vsel %vm1437_vm15, %v4368_v53, %v1541_v45  ;;  %v1550_v7 = vsel %vm4513_vm1, %v1547_v31, %v1544_v19  ;;  %3463 = vpow2.f32 %v1495_v54  ;;  %vm1558_vm4 = vcmp.lt.f32.partialorder %v1557_v6, 0.0004427343 }
 0x311   : > { %v3450_v8 = vpop.eup %3449  ;;  %3155 = vmatprep.mubr.msk.f32.mxu1 %vm795_vm2, %v4530_v32  ;;  %v4538_v5 = vsel %vm1438_vm3, %v4364_v52, %v1550_v7  ;;  %v1566_v27 = vand.u32 2147483647, %v4479_v58  ;;  %v1564_v55 = vadd.f32 1.0, %v1563_v47  ;;  %v1573_v21 = vadd.f32 1.0, %v1572_v60 }
 0x312   : > { %3156 = vmatmul.mubr.msk.f32.gmra.mrb[20].mxu1 %vm795_vm2, %v4538_v5  ;;  %v1553_v53 = vmul.f32 0.6931472, %v3450_v8  ;;  %v4546_v12 = vpop.eup %3451  ;;  %3465 = vlog2.f32 %v1587_v26  ;;  %v1596_v52 = vadd.f32 1.0, %v4525_v39  ;;  %v1575_v20 = vand.u32 2147483647, %v4487_v0 }
 0x313   : > { %v1582_v43 = vadd.f32 1.0, %v1581_v59  ;;  %vm4559_vm7 = vcmp.lt.f32.partialorder %v1566_v27, 0.0004427343  ;;  %vm1441_vm8 = vcmp.gt.f32.partialorder %v4405_v30, 20.0  ;;  %v1590_v44 = vmul.f32 -0.5, %v4517_v1 }
 0x314   : > { %v1559_v10 = vsel %vm1558_vm4, %v1556_v18, %v1553_v53  ;;  %v4551_v46 = vpop.eup %3453  ;;  %3467 = vlog2.f32 %v1596_v52  ;;  %v1605_v28 = vadd.f32 1.0, %v4546_v12  ;;  %v1565_v16 = vmul.f32 %v4479_v58, %v1564_v55 }
 0x315   : > { %v4554_v29 = vsel %vm1439_vm5, %v4380_v9, %v1559_v10  ;;  %v3456_v51 = vpop.eup %3455  ;;  %v1574_v62 = vmul.f32 %v4487_v0, %v1573_v21  ;;  %v1584_v37 = vand.u32 2147483647, %v4503_v22  ;;  %v1599_v11 = vmul.f32 -0.5, %v4525_v39 }
 0x316   : > { %3158 = vmatprep.mubr.msk.f32.mxu1 %vm795_vm2, %v4554_v29  ;;  %v3458_v9 = vpop.eup %3457  ;;  %v1562_v49 = vmul.f32 0.6931472, %v3456_v51  ;;  %3469 = vlog2.f32 %v1605_v28  ;;  %v1614_v35 = vadd.f32 1.0, %v4551_v46  ;;  %vm1576_vm9 = vcmp.lt.f32.partialorder %v1575_v20, 0.0004427343 }
 0x317   : > { %v1571_v14 = vmul.f32 0.6931472, %v3458_v9  ;;  %v4571_v24 = vpop.eup %3459  ;;  %v1583_v54 = vmul.f32 %v4503_v22, %v1582_v43  ;;  %v1593_v58 = vand.u32 2147483647, %v4517_v1  ;;  %v1591_v23 = vadd.f32 1.0, %v1590_v44 }
 0x318   : > { %v1568_v4 = vsel %vm4559_vm7, %v1565_v16, %v1562_v49  ;;  %3471 = vlog2.f32 %v1614_v35  ;;  %v1602_v33 = vand.u32 2147483647, %v4525_v39  ;;  %v1608_v19 = vmul.f32 -0.5, %v4546_v12 }
 0x319   : > { %v3462_v57 = vpop.eup %3461  ;;  %v4580_v0 = vsel %vm1440_vm6, %v4375_v56, %v1568_v4  ;;  %v1577_v61 = vsel %vm1576_vm9, %v1574_v62, %v1571_v14  ;;  %vm1585_vm10 = vcmp.lt.f32.partialorder %v1584_v37, 0.0004427343  ;;  %v1600_v56 = vadd.f32 1.0, %v1599_v11 }
 0x31a   : > { %v4582_v13 = vpop.eup %3463  ;;  %3159 = vmatmul.mubr.msk.f32.gmra.mrb[22].mxu1 %vm795_vm2, %v4580_v0  ;;  %v4589_v22 = vsel %vm1441_vm8, %v4405_v30, %v1577_v61  ;;  %v1580_v31 = vmul.f32 0.6931472, %v3462_v57  ;;  %v1623_v40 = vadd.f32 1.0, %v4571_v24  ;;  %vm1442_vm11 = vcmp.gt.f32.partialorder %v4400_v25, 20.0  ;;  %v2894_v61 = vld [vmem:[%s5196_s5 + $0x28] sm:$0xff] }
 0x31b   : > { %3161 = vmatprep.mubr.msk.f32.mxu1 %vm795_vm2, %v4589_v22  ;;  %vm1443_vm12 = vcmp.gt.f32.partialorder %v4433_v63, 20.0  ;;  %v1617_v30 = vmul.f32 -0.5, %v4551_v46  ;;  %v1592_v60 = vmul.f32 %v4517_v1, %v1591_v23  ;;  %vm1594_vm13 = vcmp.lt.f32.partialorder %v1593_v58, 0.0004427343 }
 0x31c   : > { %v3466_v6 = vpop.eup %3465  ;;  %v1586_v2 = vsel %vm1585_vm10, %v1583_v54, %v1580_v31  ;;  %3473 = vlog2.f32 %v1623_v40  ;;  %vm4605_vm14 = vcmp.lt.f32.partialorder %v1602_v33, 0.0004427343  ;;  %v1609_v59 = vadd.f32 1.0, %v1608_v19  ;;  %v4675_v33 = vld [vmem:[%s5195_s4 + $0x1] ss:$0 sm:$0xff] }
 0x31d   : > { %v4600_v45 = vsel %vm1442_vm11, %v4400_v25, %v1586_v2  ;;  %v1589_v47 = vmul.f32 0.6931472, %v3466_v6  ;;  %v1632_v26 = vadd.f32 1.0, %v4582_v13  ;;  %v1601_v25 = vmul.f32 %v4525_v39, %v1600_v56 }
 0x31e   : > { %v3468_v7 = vpop.eup %3467  ;;  %3162 = vmatmul.mubr.msk.f32.gmra.mrb[24].mxu1 %vm795_vm2, %v4600_v45  ;;  %v1611_v27 = vand.u32 2147483647, %v4546_v12  ;;  %v1618_v55 = vadd.f32 1.0, %v1617_v30  ;;  %v1626_v21 = vmul.f32 -0.5, %v4571_v24  ;;  %vm1444_vm15 = vcmp.gt.f32.partialorder %v4425_v36, 20.0 }
 0x31f   : > { %v1595_v53 = vsel %vm1594_vm13, %v1592_v60, %v1589_v47  ;;  %v1598_v18 = vmul.f32 0.6931472, %v3468_v7  ;;  %3475 = vlog2.f32 %v1632_v26  ;;  %v1620_v10 = vand.u32 2147483647, %v4551_v46 }
 0x320   : > { %v4615_v1 = vsel %vm1443_vm12, %v4433_v63, %v1595_v53  ;;  %v3470_v52 = vpop.eup %3469  ;;  %v1610_v43 = vmul.f32 %v4546_v12, %v1609_v59  ;;  %vm1445_vm0 = vcmp.gt.f32.partialorder %v4449_v38, 20.0  ;;  %vm1612_vm1 = vcmp.lt.f32.partialorder %v1611_v27, 0.0004427343 }
 0x321   : > { %3164 = vmatprep.mubr.msk.f32.mxu1 %vm795_vm2, %v4615_v1  ;;  %v1604_v39 = vsel %vm4605_vm14, %v1601_v25, %v1598_v18  ;;  %v1607_v63 = vmul.f32 0.6931472, %v3470_v52  ;;  %v1635_v41 = vmul.f32 -0.5, %v4582_v13  ;;  %v1619_v9 = vmul.f32 %v4551_v46, %v1618_v55 }
 0x322   : > { %v4625_v20 = vsel %vm1444_vm15, %v4425_v36, %v1604_v39  ;;  %v3472_v51 = vpop.eup %3471  ;;  %v1627_v49 = vadd.f32 1.0, %v1626_v21  ;;  %vm1621_vm3 = vcmp.lt.f32.partialorder %v1620_v10, 0.0004427343  ;;  %v1629_v12 = vand.u32 2147483647, %v4571_v24 }
 0x323   : > { %3165 = vmatmul.mubr.msk.f32.gmra.mrb[26].mxu1 %vm795_vm2, %v4625_v20  ;;  %v1613_v44 = vsel %vm1612_vm1, %v1610_v43, %v1607_v63  ;;  %v1616_v28 = vmul.f32 0.6931472, %v3472_v51  ;;  %vm1446_vm4 = vcmp.gt.f32.partialorder %v4446_v42, 20.0  ;;  %v1636_v14 = vadd.f32 1.0, %v1635_v41 }
 0x324   : > { %v4634_v36 = vsel %vm1445_vm0, %v4449_v38, %v1613_v44  ;;  %v1628_v38 = vmul.f32 %v4571_v24, %v1627_v49  ;;  %v1638_v11 = vand.u32 2147483647, %v4582_v13  ;;  %vm1630_vm5 = vcmp.lt.f32.partialorder %v1629_v12, 0.0004427343 }
 0x325   : > { %3167 = vmatprep.mubr.msk.f32.mxu1 %vm795_vm2, %v4634_v36  ;;  %v1622_v16 = vsel %vm1621_vm3, %v1619_v9, %v1616_v28  ;;  %vm1447_vm6 = vcmp.gt.f32.partialorder %v4464_v50, 20.0  ;;  %vm1448_vm8 = vcmp.gt.f32.partialorder %v4471_v48, 20.0 }
 0x326   : > { %v3474_v62 = vpop.eup %3473  ;;  %v4641_v37 = vsel %vm1446_vm4, %v4446_v42, %v1622_v16  ;;  %v1637_v42 = vmul.f32 %v4582_v13, %v1636_v14  ;;  %vm1639_vm7 = vcmp.lt.f32.partialorder %v1638_v11, 0.0004427343  ;;  %v2895_v13 = vld [vmem:[%s5196_s5 + $0x30] sm:$0xff] }
 0x327   : > { %3168 = vmatmul.mubr.msk.f32.gmra.mrb[28].mxu1 %vm795_vm2, %v4641_v37  ;;  %v1625_v46 = vmul.f32 0.6931472, %v3474_v62 }
 0x329   : > { %v3476_v35 = vpop.eup %3475  ;;  %v1631_v4 = vsel %vm1630_vm5, %v1628_v38, %v1625_v46 }
 0x32a   : > { %v4649_v54 = vsel %vm1447_vm6, %v4464_v50, %v1631_v4  ;;  %v1634_v58 = vmul.f32 0.6931472, %v3476_v35  ;;  %v2893_v50 = vld [vmem:[%s5196_s5 + $0x20] sm:$0xff] }
 0x32b   : > { %3170 = vmatprep.mubr.msk.f32.mxu1 %vm795_vm2, %v4649_v54  ;;  %v3261_v23 = vpack.c.bf16 %v2894_v61, %v2893_v50 }
 0x32c   : > { %v1640_v24 = vsel %vm1639_vm7, %v1637_v42, %v1634_v58 }
 0x32d   : > { %v4656_v57 = vsel %vm1448_vm8, %v4471_v48, %v1640_v24  ;;  %3262 = vmatprep.subr.bf16.mxu0 %v3261_v23  ;;  %v2896_v48 = vld [vmem:[%s5196_s5 + $0x38] sm:$0xff] }
 0x32e   : > { %3171 = vmatmul.mubr.msk.f32.gmra.mrb[30].mxu1 %vm795_vm2, %v4656_v57  ;;  %3264 = vmatpush3.bf16.msra.mxu0 %v3261_v23  ;;  %v3265_v31 = vpack.c.bf16 %v2896_v48, %v2895_v13 }
 0x330   : > { %3266 = vmatprep.subr.bf16.mxu0 %v3265_v31 }
 0x332   : > { %3268 = vmatpush3.bf16.msra.mxu0 %v3265_v31 }
 0x3d2   : > { %v3151_v19 = vpop.f32.mrb[16].mxu1 }
 0x3d3   : > { %v4678_v56 = vadd.f32 %v3151_v19, %v4675_v33  ;;  %v1784_v40 = vpop.f32.mrb[17].mxu1 }
 0x3d4   : > { %v1785_v6 = vadd.f32 %v4675_v33, %v1784_v40 }
 0x3d5   : > { %v1880_v2 = vmin.f32 %v4678_v56, 20.0  ;;  %vm1864_vm12 = vcmp.gt.f32.partialorder %v4678_v56, 20.0 }
 0x3d6   : > { %v1879_v30 = vmin.f32 %v1785_v6, 20.0  ;;  %vm1863_vm11 = vcmp.gt.f32.partialorder %v1785_v6, 20.0 }
 0x3d7   : > { %v1897_v47 = vmul.f32 1.442695, %v1880_v2 }
 0x3d8   : > { %v1895_v60 = vmul.f32 1.442695, %v1879_v30 }
 0x3d9   : > { %3477 = vpow2.f32 %v1897_v47 }
 0x3da   : > { %3479 = vpow2.f32 %v1895_v60 }
 0x3de   : > { %v3154_v7 = vpop.f32.mrb[18].mxu1 }
 0x3df   : > { %v4683_v8 = vadd.f32 %v3154_v7, %v4675_v33  ;;  %v1794_v59 = vpop.f32.mrb[19].mxu1 }
 0x3e0   : > { %v4686_v53 = vadd.f32 %v4675_v33, %v1794_v59 }
 0x3e1   : > { %v1882_v27 = vmin.f32 %v4683_v8, 20.0  ;;  %vm1866_vm15 = vcmp.gt.f32.partialorder %v4683_v8, 20.0 }
 0x3e2   : > { %v1881_v55 = vmin.f32 %v4686_v53, 20.0  ;;  %vm1865_vm13 = vcmp.gt.f32.partialorder %v4686_v53, 20.0 }
 0x3e3   : > { %v3478_v26 = vpop.eup %3477  ;;  %v1901_v52 = vmul.f32 1.442695, %v1882_v27 }
 0x3e4   : > { %v3480_v18 = vpop.eup %3479  ;;  %v1936_v25 = vadd.f32 1.0, %v3478_v26  ;;  %v1899_v39 = vmul.f32 1.442695, %v1881_v55  ;;  %v1939_v10 = vmul.f32 -0.5, %v3478_v26  ;;  %v1942_v12 = vand.u32 2147483647, %v3478_v26 }
 0x3e5   : > { %v1927_v21 = vadd.f32 1.0, %v3480_v18  ;;  %v3157_v63 = vpop.f32.mrb[20].mxu1  ;;  %v1930_v41 = vmul.f32 -0.5, %v3480_v18  ;;  %v1933_v46 = vand.u32 2147483647, %v3480_v18 }
 0x3e6   : > { %3481 = vlog2.f32 %v1936_v25  ;;  %v4691_v43 = vadd.f32 %v3157_v63, %v4675_v33  ;;  %v1804_v51 = vpop.f32.mrb[21].mxu1  ;;  %v1940_v9 = vadd.f32 1.0, %v1939_v10  ;;  %vm4698_vm9 = vcmp.lt.f32.partialorder %v1942_v12, 0.0004427343 }
 0x3e7   : > { %3483 = vlog2.f32 %v1927_v21  ;;  %v4694_v44 = vadd.f32 %v4675_v33, %v1804_v51  ;;  %v1931_v16 = vadd.f32 1.0, %v1930_v41  ;;  %vm1934_vm10 = vcmp.lt.f32.partialorder %v1933_v46, 0.0004427343 }
 0x3e8   : > { %3485 = vpow2.f32 %v1901_v52  ;;  %v1884_v28 = vmin.f32 %v4691_v43, 20.0  ;;  %v1941_v4 = vmul.f32 %v3478_v26, %v1940_v9  ;;  %vm1868_vm4 = vcmp.gt.f32.partialorder %v4691_v43, 20.0 }
 0x3e9   : > { %3487 = vpow2.f32 %v1899_v39  ;;  %v1883_v49 = vmin.f32 %v4694_v44, 20.0  ;;  %v1932_v50 = vmul.f32 %v3480_v18, %v1931_v16  ;;  %vm1867_vm1 = vcmp.gt.f32.partialorder %v4694_v44, 20.0 }
 0x3ea   : > { %v1905_v62 = vmul.f32 1.442695, %v1884_v28 }
 0x3eb   : > { %v1903_v14 = vmul.f32 1.442695, %v1883_v49 }
 0x3ed   : > { %3489 = vpow2.f32 %v1903_v14  ;;  %v3160_v42 = vpop.f32.mrb[22].mxu1 }
 0x3ee   : > { %3491 = vpow2.f32 %v1905_v62  ;;  %v4707_v13 = vadd.f32 %v3160_v42, %v4675_v33  ;;  %v1814_v48 = vpop.f32.mrb[23].mxu1 }
 0x3ef   : > { %v4710_v19 = vadd.f32 %v4675_v33, %v1814_v48 }
 0x3f0   : > { %v3482_v38 = vpop.eup %3481  ;;  %v1886_v2 = vmin.f32 %v4707_v13, 20.0  ;;  %vm1870_vm6 = vcmp.gt.f32.partialorder %v4707_v13, 20.0 }
 0x3f1   : > { %v3484_v11 = vpop.eup %3483  ;;  %v1938_v35 = vmul.f32 0.6931472, %v3482_v38  ;;  %v1885_v7 = vmin.f32 %v4710_v19, 20.0  ;;  %v3163_v59 = vpop.f32.mrb[24].mxu1  ;;  %vm1869_vm7 = vcmp.gt.f32.partialorder %v4710_v19, 20.0 }
 0x3f2   : > { %v1929_v24 = vmul.f32 0.6931472, %v3484_v11  ;;  %v4702_v61 = vpop.eup %3485  ;;  %v1909_v26 = vmul.f32 1.442695, %v1886_v2  ;;  %v4718_v18 = vadd.f32 %v3163_v59, %v4675_v33  ;;  %v1824_v25 = vpop.f32.mrb[25].mxu1 }
 0x3f3   : > { %v1944_v23 = vsel %vm4698_vm9, %v1941_v4, %v1938_v35  ;;  %v3488_v31 = vpop.eup %3487  ;;  %v1954_v27 = vadd.f32 1.0, %v4702_v61  ;;  %v1907_v55 = vmul.f32 1.442695, %v1885_v7  ;;  %v1957_v28 = vmul.f32 -0.5, %v4702_v61 }
 0x3f4   : > { %v1935_v40 = vsel %vm1934_vm10, %v1932_v50, %v1929_v24  ;;  %v1945_v47 = vadd.f32 1.0, %v3488_v31  ;;  %v2072_v60 = vsel %vm1864_vm12, %v4678_v56, %v1944_v23  ;;  %v1888_v56 = vmin.f32 %v4718_v18, 20.0 }
 0x3f5   : > { %v2071_v30 = vsel %vm1863_vm11, %v1785_v6, %v1935_v40  ;;  %v4723_v6 = vadd.f32 %v4675_v33, %v1824_v25  ;;  %v1948_v52 = vmul.f32 -0.5, %v3488_v31  ;;  %v1951_v38 = vand.u32 2147483647, %v3488_v31 }
 0x3f6   : > { %3181 = vmatprep.mubr.msk.f32.mxu0 %vm795_vm2, %v2071_v30  ;;  %3493 = vlog2.f32 %v1945_v47  ;;  %v3166_v10 = vpop.f32.mrb[26].mxu1  ;;  %v1913_v12 = vmul.f32 1.442695, %v1888_v56  ;;  %v1958_v35 = vadd.f32 1.0, %v1957_v28  ;;  %v1960_v7 = vand.u32 2147483647, %v4702_v61 }
 0x3f7   : > { %3182 = vmatmul.mubr.msk.f32.vlgmr.msra.gmra.mrb[32].mxu0 %vm795_vm2, %v2072_v60  ;;  %3495 = vpow2.f32 %v1909_v26  ;;  %v1887_v21 = vmin.f32 %v4723_v6, 20.0  ;;  %v4727_v39 = vpop.eup %3489  ;;  %v4730_v51 = vadd.f32 %v3166_v10, %v4675_v33  ;;  %v1834_v41 = vpop.f32.mrb[27].mxu1  ;;  %v1949_v14 = vadd.f32 1.0, %v1948_v52 }
 0x3f8   : > { %3497 = vpow2.f32 %v1907_v55  ;;  %v1963_v9 = vadd.f32 1.0, %v4727_v39  ;;  %v4734_v49 = vpop.eup %3491  ;;  %v4737_v16 = vadd.f32 %v4675_v33, %v1834_v41  ;;  %v1966_v23 = vmul.f32 -0.5, %v4727_v39 }
 0x3f9   : > { %3499 = vlog2.f32 %v1954_v27  ;;  %v1911_v63 = vmul.f32 1.442695, %v1887_v21  ;;  %v1890_v62 = vmin.f32 %v4730_v51, 20.0  ;;  %v1972_v4 = vadd.f32 1.0, %v4734_v49 }
 0x3fa   : > { %v1889_v46 = vmin.f32 %v4737_v16, 20.0  ;;  %v3169_v11 = vpop.f32.mrb[28].mxu1  ;;  %v1950_v30 = vmul.f32 %v3488_v31, %v1949_v14  ;;  %vm1952_vm14 = vcmp.lt.f32.partialorder %v1951_v38, 0.0004427343  ;;  %v1959_v27 = vmul.f32 %v4702_v61, %v1958_v35 }
 0x3fb   : > { %3501 = vpow2.f32 %v1911_v63  ;;  %v4744_v24 = vadd.f32 %v3169_v11, %v4675_v33  ;;  %v1844_v50 = vpop.f32.mrb[29].mxu1  ;;  %v1917_v48 = vmul.f32 1.442695, %v1890_v62  ;;  %v1967_v56 = vadd.f32 1.0, %v1966_v23 }
 0x3fc   : > { %3503 = vlog2.f32 %v1963_v9  ;;  %v1915_v42 = vmul.f32 1.442695, %v1889_v46  ;;  %v4748_v40 = vadd.f32 %v4675_v33, %v1844_v50  ;;  %v1969_v21 = vand.u32 2147483647, %v4727_v39 }
 0x3fd   : > { %3505 = vpow2.f32 %v1913_v12  ;;  %v1892_v60 = vmin.f32 %v4744_v24, 20.0  ;;  %vm1961_vm0 = vcmp.lt.f32.partialorder %v1960_v7, 0.0004427343  ;;  %v1975_v28 = vmul.f32 -0.5, %v4734_v49 }
 0x3fe   : > { %3507 = vpow2.f32 %v1915_v42  ;;  %v1891_v26 = vmin.f32 %v4748_v40, 20.0  ;;  %vm4777_vm3 = vcmp.lt.f32.partialorder %v1969_v21, 0.0004427343  ;;  %v1968_v42 = vmul.f32 %v4727_v39, %v1967_v56 }
 0x3ff   : > { %3509 = vlog2.f32 %v1972_v4  ;;  %v1921_v10 = vmul.f32 1.442695, %v1892_v60  ;;  %v1976_v23 = vadd.f32 1.0, %v1975_v28  ;;  %vm1871_vm8 = vcmp.gt.f32.partialorder %v4723_v6, 20.0 }
 0x400   : > { %v3494_v58 = vpop.eup %3493  ;;  %3511 = vpow2.f32 %v1917_v48  ;;  %v1919_v63 = vmul.f32 1.442695, %v1891_v26  ;;  %vm1872_vm10 = vcmp.gt.f32.partialorder %v4718_v18, 20.0  ;;  %vm1873_vm11 = vcmp.gt.f32.partialorder %v4737_v16, 20.0 }
 0x401   : > { %v1947_v2 = vmul.f32 0.6931472, %v3494_v58  ;;  %v4750_v47 = vpop.eup %3495  ;;  %v3172_v61 = vpop.f32.mrb[30].mxu1  ;;  %v1977_v56 = vmul.f32 %v4734_v49, %v1976_v23 }
 0x402   : > { %v4754_v59 = vpop.eup %3497  ;;  %v1990_v9 = vadd.f32 1.0, %v4750_v47  ;;  %3513 = vpow2.f32 %v1919_v63  ;;  %v4771_v12 = vadd.f32 %v3172_v61, %v4675_v33  ;;  %v1854_v62 = vpop.f32.mrb[31].mxu1 }
 0x403   : > { %v1953_v25 = vsel %vm1952_vm14, %v1950_v30, %v1947_v2  ;;  %v3500_v55 = vpop.eup %3499  ;;  %v1981_v52 = vadd.f32 1.0, %v4754_v59  ;;  %v4774_v38 = vadd.f32 %v4675_v33, %v1854_v62  ;;  %v1984_v30 = vmul.f32 -0.5, %v4754_v59 }
 0x404   : > { %v2073_v31 = vsel %vm1865_vm13, %v4686_v53, %v1953_v25  ;;  %v1956_v41 = vmul.f32 0.6931472, %v3500_v55  ;;  %v1894_v4 = vmin.f32 %v4771_v12, 20.0  ;;  %v1993_v25 = vmul.f32 -0.5, %v4750_v47 }
 0x405   : > { %3184 = vmatprep.mubr.msk.f32.mxu0 %vm795_vm2, %v2073_v31  ;;  %v4767_v53 = vpop.eup %3501  ;;  %3515 = vlog2.f32 %v1981_v52  ;;  %v1893_v33 = vmin.f32 %v4774_v38, 20.0  ;;  %v1985_v52 = vadd.f32 1.0, %v1984_v30  ;;  %v1996_v62 = vand.u32 2147483647, %v4750_v47 }
 0x406   : > { %v1962_v14 = vsel %vm1961_vm0, %v1959_v27, %v1956_v41  ;;  %v3504_v46 = vpop.eup %3503  ;;  %3517 = vpow2.f32 %v1921_v10  ;;  %v1925_v48 = vmul.f32 1.442695, %v1894_v4  ;;  %v1999_v60 = vadd.f32 1.0, %v4767_v53 }
 0x407   : > { %v2074_v11 = vsel %vm1866_vm15, %v4683_v8, %v1962_v14  ;;  %v1965_v58 = vmul.f32 0.6931472, %v3504_v46  ;;  %v4784_v50 = vpop.eup %3505  ;;  %v1978_v8 = vand.u32 2147483647, %v4734_v49  ;;  %3519 = vlog2.f32 %v1990_v9 }
 0x408   : > { %3185 = vmatmul.mubr.msk.f32.gmra.mrb[34].mxu0 %vm795_vm2, %v2074_v11  ;;  %v4792_v7 = vpop.eup %3507  ;;  %v1923_v26 = vmul.f32 1.442695, %v1893_v33  ;;  %3521 = vpow2.f32 %v1925_v48  ;;  %v2008_v55 = vadd.f32 1.0, %v4784_v50  ;;  %v1994_v41 = vadd.f32 1.0, %v1993_v25 }
 0x409   : > { %v1971_v2 = vsel %vm4777_vm3, %v1968_v42, %v1965_v58  ;;  %v3510_v27 = vpop.eup %3509  ;;  %vm1979_vm5 = vcmp.lt.f32.partialorder %v1978_v8, 0.0004427343  ;;  %v2017_v10 = vadd.f32 1.0, %v4792_v7  ;;  %v2002_v61 = vmul.f32 -0.5, %v4767_v53 }
 0x40a   : > { %v2075_v39 = vsel %vm1867_vm1, %v4694_v44, %v1971_v2  ;;  %3523 = vpow2.f32 %v1923_v26  ;;  %v1974_v31 = vmul.f32 0.6931472, %v3510_v27  ;;  %v4802_v21 = vpop.eup %3511  ;;  %v1987_v44 = vand.u32 2147483647, %v4754_v59 }
 0x40b   : > { %3187 = vmatprep.mubr.msk.f32.mxu0 %vm795_vm2, %v2075_v39  ;;  %3525 = vlog2.f32 %v1999_v60  ;;  %v2005_v14 = vand.u32 2147483647, %v4767_v53  ;;  %v2011_v46 = vmul.f32 -0.5, %v4784_v50  ;;  %v2026_v11 = vadd.f32 1.0, %v4802_v21 }
 0x40c   : > { %v1980_v63 = vsel %vm1979_vm5, %v1977_v56, %v1974_v31  ;;  %3527 = vlog2.f32 %v2008_v55  ;;  %v4807_v28 = vpop.eup %3513  ;;  %v1986_v58 = vmul.f32 %v4754_v59, %v1985_v52  ;;  %v2020_v42 = vmul.f32 -0.5, %v4792_v7 }
 0x40d   : > { %v2076_v49 = vsel %vm1868_vm4, %v4691_v43, %v1980_v63  ;;  %3529 = vlog2.f32 %v2017_v10  ;;  %v2035_v43 = vadd.f32 1.0, %v4807_v28  ;;  %vm1988_vm9 = vcmp.lt.f32.partialorder %v1987_v44, 0.0004427343 }
 0x40e   : > { %3188 = vmatmul.mubr.msk.f32.gmra.mrb[36].mxu0 %vm795_vm2, %v2076_v49  ;;  %v1995_v23 = vmul.f32 %v4750_v47, %v1994_v41  ;;  %v2003_v8 = vadd.f32 1.0, %v2002_v61  ;;  %3531 = vlog2.f32 %v2026_v11  ;;  %v2014_v30 = vand.u32 2147483647, %v4784_v50 }
 0x40f   : > { %v3516_v9 = vpop.eup %3515  ;;  %3533 = vlog2.f32 %v2035_v43  ;;  %vm1997_vm12 = vcmp.lt.f32.partialorder %v1996_v62, 0.0004427343  ;;  %vm4832_vm13 = vcmp.lt.f32.partialorder %v2005_v14, 0.0004427343  ;;  %v2012_v47 = vadd.f32 1.0, %v2011_v46 }
 0x410   : > { %v4819_v35 = vpop.eup %3517  ;;  %v1983_v4 = vmul.f32 0.6931472, %v3516_v9  ;;  %v2021_v25 = vadd.f32 1.0, %v2020_v42  ;;  %v2029_v27 = vmul.f32 -0.5, %v4802_v21  ;;  %v2004_v56 = vmul.f32 %v4767_v53, %v2003_v8 }
 0x411   : > { %v3520_v33 = vpop.eup %3519  ;;  %v2044_v55 = vadd.f32 1.0, %v4819_v35  ;;  %v2038_v52 = vmul.f32 -0.5, %v4807_v28  ;;  %vm4850_vm14 = vcmp.lt.f32.partialorder %v2014_v30, 0.0004427343  ;;  %v2023_v41 = vand.u32 2147483647, %v4792_v7 }
 0x412   : > { %v1989_v48 = vsel %vm1988_vm9, %v1986_v58, %v1983_v4  ;;  %v1992_v2 = vmul.f32 0.6931472, %v3520_v33  ;;  %v4836_v26 = vpop.eup %3521  ;;  %v2013_v53 = vmul.f32 %v4784_v50, %v2012_v47  ;;  %v2032_v9 = vand.u32 2147483647, %v4802_v21 }
 0x413   : > { %v2077_v59 = vsel %vm1869_vm7, %v4710_v19, %v1989_v48  ;;  %v2062_v44 = vadd.f32 1.0, %v4836_v26  ;;  %3535 = vlog2.f32 %v2044_v55  ;;  %v2022_v46 = vmul.f32 %v4792_v7, %v2021_v25 }
 0x414   : > { %3190 = vmatprep.mubr.msk.f32.mxu0 %vm795_vm2, %v2077_v59  ;;  %v1998_v39 = vsel %vm1997_vm12, %v1995_v23, %v1992_v2  ;;  %v4841_v31 = vpop.eup %3523  ;;  %v2030_v11 = vadd.f32 1.0, %v2029_v27  ;;  %v2039_v42 = vadd.f32 1.0, %v2038_v52  ;;  %v2047_v43 = vmul.f32 -0.5, %v4819_v35 }
 0x415   : > { %v2078_v19 = vsel %vm1870_vm6, %v4707_v13, %v1998_v39  ;;  %v3526_v10 = vpop.eup %3525  ;;  %v2053_v61 = vadd.f32 1.0, %v4841_v31  ;;  %3537 = vlog2.f32 %v2062_v44  ;;  %vm2024_vm15 = vcmp.lt.f32.partialorder %v2023_v41, 0.0004427343 }
 0x416   : > { %3191 = vmatmul.mubr.msk.f32.gmra.mrb[38].mxu0 %vm795_vm2, %v2078_v19  ;;  %v3528_v49 = vpop.eup %3527  ;;  %v2001_v13 = vmul.f32 0.6931472, %v3526_v10  ;;  %v2041_v23 = vand.u32 2147483647, %v4807_v28  ;;  %v2056_v2 = vmul.f32 -0.5, %v4841_v31  ;;  %v2065_v30 = vmul.f32 -0.5, %v4836_v26 }
 0x417   : > { %v3530_v62 = vpop.eup %3529  ;;  %v2010_v14 = vmul.f32 0.6931472, %v3528_v49  ;;  %3539 = vlog2.f32 %v2053_v61  ;;  %vm1874_vm0 = vcmp.gt.f32.partialorder %v4730_v51, 20.0  ;;  %v2031_v47 = vmul.f32 %v4802_v21, %v2030_v11 }
 0x418   : > { %v2007_v4 = vsel %vm4832_vm13, %v2004_v56, %v2001_v13  ;;  %v2019_v58 = vmul.f32 0.6931472, %v3530_v62  ;;  %v3532_v7 = vpop.eup %3531  ;;  %vm2033_vm1 = vcmp.lt.f32.partialorder %v2032_v9, 0.0004427343  ;;  %v2040_v39 = vmul.f32 %v4807_v28, %v2039_v42 }
 0x419   : > { %v2079_v50 = vsel %vm1871_vm8, %v4723_v6, %v2007_v4  ;;  %v2016_v33 = vsel %vm4850_vm14, %v2013_v53, %v2010_v14  ;;  %v3534_v59 = vpop.eup %3533  ;;  %v2028_v60 = vmul.f32 0.6931472, %v3532_v7  ;;  %v2048_v25 = vadd.f32 1.0, %v2047_v43 }
 0x41a   : > { %3193 = vmatprep.mubr.msk.f32.mxu0 %vm795_vm2, %v2079_v50  ;;  %v2080_v8 = vsel %vm1872_vm10, %v4718_v18, %v2016_v33  ;;  %v2025_v48 = vsel %vm2024_vm15, %v2022_v46, %v2019_v58  ;;  %v2037_v18 = vmul.f32 0.6931472, %v3534_v59  ;;  %vm1875_vm3 = vcmp.gt.f32.partialorder %v4748_v40, 20.0  ;;  %v4917_v58 = vld [vmem:[%s5197_s6 + $0x1] ss:$0 sm:$0xff] }
 0x41b   : > { %3194 = vmatmul.mubr.msk.f32.gmra.mrb[40].mxu0 %vm795_vm2, %v2080_v8  ;;  %v2081_v6 = vsel %vm1873_vm11, %v4737_v16, %v2025_v48  ;;  %v2034_v27 = vsel %vm2033_vm1, %v2031_v47, %v2028_v60  ;;  %vm2042_vm4 = vcmp.lt.f32.partialorder %v2041_v23, 0.0004427343  ;;  %v2050_v55 = vand.u32 2147483647, %v4819_v35 }
 0x41c   : > { %3196 = vmatprep.mubr.msk.f32.mxu0 %vm795_vm2, %v2081_v6  ;;  %v2082_v19 = vsel %vm1874_vm0, %v4730_v51, %v2034_v27  ;;  %v2043_v56 = vsel %vm2042_vm4, %v2040_v39, %v2037_v18  ;;  %v2057_v16 = vadd.f32 1.0, %v2056_v2  ;;  %v2066_v52 = vadd.f32 1.0, %v2065_v30 }
 0x41d   : > { %v3536_v44 = vpop.eup %3535  ;;  %v2083_v21 = vsel %vm1875_vm3, %v4748_v40, %v2043_v56  ;;  %v2059_v10 = vand.u32 2147483647, %v4841_v31  ;;  %v2068_v28 = vand.u32 2147483647, %v4836_v26  ;;  %v2049_v61 = vmul.f32 %v4819_v35, %v2048_v25 }
 0x41e   : > { %v2046_v41 = vmul.f32 0.6931472, %v3536_v44  ;;  %vm1876_vm5 = vcmp.gt.f32.partialorder %v4744_v24, 20.0  ;;  %vm2051_vm6 = vcmp.lt.f32.partialorder %v2050_v55, 0.0004427343  ;;  %v2058_v9 = vmul.f32 %v4841_v31, %v2057_v16 }
 0x41f   : > { %3197 = vmatmul.mubr.msk.f32.gmra.mrb[42].mxu0 %vm795_vm2, %v2082_v19  ;;  %v3538_v63 = vpop.eup %3537  ;;  %v2067_v40 = vmul.f32 %v4836_v26, %v2066_v52  ;;  %vm2060_vm7 = vcmp.lt.f32.partialorder %v2059_v10, 0.0004427343  ;;  %vm2069_vm8 = vcmp.lt.f32.partialorder %v2068_v28, 0.0004427343  ;;  %vm1877_vm9 = vcmp.gt.f32.partialorder %v4774_v38, 20.0  ;;  %v2534_v26 = vld [vmem:[%s5198_s7 + $0x8] sm:$0xff] }
 0x420   : > { %3199 = vmatprep.mubr.msk.f32.mxu0 %vm795_vm2, %v2083_v21  ;;  %v2064_v51 = vmul.f32 0.6931472, %v3538_v63  ;;  %v2052_v13 = vsel %vm2051_vm6, %v2049_v61, %v2046_v41  ;;  %vm1878_vm10 = vcmp.gt.f32.partialorder %v4771_v12, 20.0 }
 0x421   : > { %v3540_v49 = vpop.eup %3539  ;;  %v2084_v62 = vsel %vm1876_vm5, %v4744_v24, %v2052_v13  ;;  %v2533_v24 = vld [vmem:[%s5198_s7] sm:$0xff] }
 0x422   : > { %v2055_v53 = vmul.f32 0.6931472, %v3540_v49  ;;  %v2070_v14 = vsel %vm2069_vm8, %v2067_v40, %v2064_v51  ;;  %v3269_v11 = vpack.c.bf16 %v2534_v26, %v2533_v24 }
 0x423   : > { %3200 = vmatmul.mubr.msk.f32.gmra.mrb[44].mxu0 %vm795_vm2, %v2084_v62  ;;  %v2086_v31 = vsel %vm1878_vm10, %v4771_v12, %v2070_v14  ;;  %v2536_v12 = vld [vmem:[%s5198_s7 + $0x18] sm:$0xff] }
 0x424   : > { %v2061_v35 = vsel %vm2060_vm7, %v2058_v9, %v2055_v53  ;;  %3270 = vmatprep.subr.bf16.mxu1 %v3269_v11 }
 0x425   : > { %v2085_v46 = vsel %vm1877_vm9, %v4774_v38, %v2061_v35  ;;  %3272 = vmatpush3.bf16.msra.mxu1 %v3269_v11  ;;  %v2535_v38 = vld [vmem:[%s5198_s7 + $0x10] sm:$0xff] }
 0x426   : > { %3202 = vmatprep.mubr.msk.f32.mxu0 %vm795_vm2, %v2085_v46  ;;  %v3273_v4 = vpack.c.bf16 %v2536_v12, %v2535_v38 }
 0x427   : > { %3203 = vmatmul.mubr.msk.f32.gmra.mrb[46].mxu0 %vm795_vm2, %v2086_v31 }
 0x428   : > { %3274 = vmatprep.subr.bf16.mxu1 %v3273_v4 }
 0x429   : > { %3276 = vmatpush3.bf16.msra.mxu1 %v3273_v4 }
 0x4ca   : > { %v3183_v42 = vpop.f32.mrb[32].mxu0 }
 0x4cb   : > { %v2220_v43 = vadd.f32 %v3183_v42, %v4917_v58  ;;  %v2214_v50 = vpop.f32.mrb[33].mxu0 }
 0x4cc   : > { %v2215_v33 = vadd.f32 %v4917_v58, %v2214_v50 }
 0x4cd   : > { %v2294_v23 = vadd.f32 %v2220_v43, %v4422_v17 }
 0x4ce   : > { %v2293_v7 = vadd.f32 %v2215_v33, %v4417_v15 }
 0x4cf   : > { %v2326_v8 = vmin.f32 %v2294_v23, 20.0  ;;  %vm2310_vm14 = vcmp.gt.f32.partialorder %v2294_v23, 20.0 }
 0x4d0   : > { %v2325_v48 = vmin.f32 %v2293_v7, 20.0  ;;  %vm2309_vm12 = vcmp.gt.f32.partialorder %v2293_v7, 20.0 }
 0x4d1   : > { %v2343_v2 = vmul.f32 1.442695, %v2326_v8 }
 0x4d2   : > { %v2341_v30 = vmul.f32 1.442695, %v2325_v48 }
 0x4d3   : > { %3541 = vpow2.f32 %v2343_v2 }
 0x4d4   : > { %3543 = vpow2.f32 %v2341_v30 }
 0x4db   : > { %v3186_v6 = vpop.f32.mrb[34].mxu0 }
 0x4dc   : > { %v2230_v18 = vadd.f32 %v3186_v6, %v4917_v58  ;;  %v2224_v39 = vpop.f32.mrb[35].mxu0 }
 0x4dd   : > { %v3542_v59 = vpop.eup %3541  ;;  %v2225_v25 = vadd.f32 %v4917_v58, %v2224_v39 }
 0x4de   : > { %v3544_v60 = vpop.eup %3543  ;;  %v2382_v47 = vadd.f32 1.0, %v3542_v59  ;;  %v4926_v17 = vadd.f32 %v2230_v18, %v4496_v34  ;;  %v2385_v19 = vmul.f32 -0.5, %v3542_v59  ;;  %v2388_v63 = vand.u32 2147483647, %v3542_v59 }
 0x4df   : > { %v2373_v27 = vadd.f32 1.0, %v3544_v60  ;;  %v4929_v15 = vadd.f32 %v2225_v25, %v4485_v3  ;;  %v2376_v52 = vmul.f32 -0.5, %v3544_v60  ;;  %v2379_v49 = vand.u32 2147483647, %v3544_v60 }
 0x4e0   : > { %3545 = vlog2.f32 %v2382_v47  ;;  %v2328_v55 = vmin.f32 %v4926_v17, 20.0  ;;  %v2386_v10 = vadd.f32 1.0, %v2385_v19  ;;  %vm4942_vm11 = vcmp.lt.f32.partialorder %v2388_v63, 0.0004427343 }
 0x4e1   : > { %3547 = vlog2.f32 %v2373_v27  ;;  %v2327_v56 = vmin.f32 %v4929_v15, 20.0  ;;  %v3189_v21 = vpop.f32.mrb[36].mxu0  ;;  %v2377_v41 = vadd.f32 1.0, %v2376_v52  ;;  %vm2380_vm13 = vcmp.lt.f32.partialorder %v2379_v49, 0.0004427343 }
 0x4e2   : > { %v2347_v16 = vmul.f32 1.442695, %v2328_v55  ;;  %v2240_v28 = vadd.f32 %v3189_v21, %v4917_v58  ;;  %v2234_v34 = vpop.f32.mrb[37].mxu0  ;;  %v2387_v40 = vmul.f32 %v3542_v59, %v2386_v10  ;;  %vm2311_vm15 = vcmp.gt.f32.partialorder %v4929_v15, 20.0 }
 0x4e3   : > { %v2345_v44 = vmul.f32 1.442695, %v2327_v56  ;;  %v2235_v3 = vadd.f32 %v4917_v58, %v2234_v34  ;;  %v2378_v31 = vmul.f32 %v3544_v60, %v2377_v41  ;;  %vm2312_vm0 = vcmp.gt.f32.partialorder %v4926_v17, 20.0 }
 0x4e4   : > { %3549 = vpow2.f32 %v2347_v16  ;;  %v4936_v61 = vadd.f32 %v2240_v28, %v4538_v5 }
 0x4e5   : > { %3551 = vpow2.f32 %v2345_v44  ;;  %v4939_v13 = vadd.f32 %v2235_v3, %v4530_v32 }
 0x4e6   : > { %v2330_v62 = vmin.f32 %v4936_v61, 20.0  ;;  %vm2314_vm6 = vcmp.gt.f32.partialorder %v4936_v61, 20.0 }
 0x4e7   : > { %v2329_v14 = vmin.f32 %v4939_v13, 20.0  ;;  %vm2313_vm4 = vcmp.gt.f32.partialorder %v4939_v13, 20.0 }
 0x4e8   : > { %v2351_v32 = vmul.f32 1.442695, %v2330_v62 }
 0x4e9   : > { %v3192_v24 = vpop.f32.mrb[38].mxu0  ;;  %v2349_v26 = vmul.f32 1.442695, %v2329_v14 }
 0x4ea   : > { %v3546_v51 = vpop.eup %3545  ;;  %v2250_v11 = vadd.f32 %v3192_v24, %v4917_v58  ;;  %v2244_v38 = vpop.f32.mrb[39].mxu0 }
 0x4eb   : > { %v3548_v53 = vpop.eup %3547  ;;  %v2384_v9 = vmul.f32 0.6931472, %v3546_v51  ;;  %v2245_v4 = vadd.f32 %v4917_v58, %v2244_v38  ;;  %3553 = vpow2.f32 %v2349_v26 }
 0x4ec   : > { %v2375_v46 = vmul.f32 0.6931472, %v3548_v53  ;;  %v4952_v33 = vadd.f32 %v2250_v11, %v4580_v0  ;;  %3555 = vpow2.f32 %v2351_v32 }
 0x4ed   : > { %v2390_v5 = vsel %vm4942_vm11, %v2387_v40, %v2384_v9  ;;  %v4958_v48 = vadd.f32 %v2245_v4, %v4554_v29 }
 0x4ee   : > { %v2381_v12 = vsel %vm2380_vm13, %v2378_v31, %v2375_v46  ;;  %v3550_v43 = vpop.eup %3549  ;;  %v2518_v50 = vsel %vm2310_vm14, %v2294_v23, %v2390_v5  ;;  %v2332_v30 = vmin.f32 %v4952_v33, 20.0  ;;  %v3195_v59 = vpop.f32.mrb[40].mxu0  ;;  %vm2316_vm10 = vcmp.gt.f32.partialorder %v4952_v33, 20.0 }
 0x4ef   : > { %v2517_v42 = vsel %vm2309_vm12, %v2293_v7, %v2381_v12  ;;  %v4955_v8 = vpop.eup %3551  ;;  %v2400_v2 = vadd.f32 1.0, %v3550_v43  ;;  %v2331_v23 = vmin.f32 %v4958_v48, 20.0  ;;  %v2260_v0 = vadd.f32 %v3195_v59, %v4917_v58  ;;  %v2254_v6 = vpop.f32.mrb[41].mxu0 }
 0x4f0   : > { %3213 = vmatprep.mubr.msk.f32.mxu1 %vm795_vm2, %v2517_v42  ;;  %v2391_v7 = vadd.f32 1.0, %v4955_v8  ;;  %v2403_v60 = vmul.f32 -0.5, %v3550_v43  ;;  %v2355_v47 = vmul.f32 1.442695, %v2332_v30  ;;  %v2255_v18 = vadd.f32 %v4917_v58, %v2254_v6 }
 0x4f1   : > { %3214 = vmatmul.mubr.msk.f32.vlgmr.msra.gmra.mrb[32].mxu1 %vm795_vm2, %v2518_v50  ;;  %3557 = vlog2.f32 %v2400_v2  ;;  %v2353_v29 = vmul.f32 1.442695, %v2331_v23  ;;  %v2394_v39 = vmul.f32 -0.5, %v4955_v8  ;;  %v4968_v25 = vadd.f32 %v2260_v0, %v4600_v45 }
 0x4f2   : > { %3559 = vlog2.f32 %v2391_v7  ;;  %v4971_v27 = vadd.f32 %v2255_v18, %v4589_v22  ;;  %v3198_v55 = vpop.f32.mrb[42].mxu0  ;;  %v2404_v52 = vadd.f32 1.0, %v2403_v60  ;;  %v2406_v44 = vand.u32 2147483647, %v3550_v43 }
 0x4f3   : > { %3561 = vpow2.f32 %v2353_v29  ;;  %v2334_v19 = vmin.f32 %v4968_v25, 20.0  ;;  %v2270_v56 = vadd.f32 %v3198_v55, %v4917_v58  ;;  %v2264_v16 = vpop.f32.mrb[43].mxu0  ;;  %v2395_v28 = vadd.f32 1.0, %v2394_v39 }
 0x4f4   : > { %3563 = vpow2.f32 %v2355_v47  ;;  %v2333_v21 = vmin.f32 %v4971_v27, 20.0  ;;  %v2265_v10 = vadd.f32 %v4917_v58, %v2264_v16  ;;  %v2397_v41 = vand.u32 2147483647, %v4955_v8 }
 0x4f5   : > { %v4977_v45 = vpop.eup %3553  ;;  %v2359_v34 = vmul.f32 1.442695, %v2334_v19  ;;  %v4980_v22 = vadd.f32 %v2270_v56, %v4625_v20  ;;  %v2405_v20 = vmul.f32 %v3550_v43, %v2404_v52  ;;  %vm4992_vm1 = vcmp.lt.f32.partialorder %v2406_v44, 0.0004427343 }
 0x4f6   : > { %v2357_v63 = vmul.f32 1.442695, %v2333_v21  ;;  %v4985_v3 = vadd.f32 %v2265_v10, %v4615_v1  ;;  %v2409_v49 = vadd.f32 1.0, %v4977_v45  ;;  %v4989_v51 = vpop.eup %3555  ;;  %v3201_v9 = vpop.f32.mrb[44].mxu0  ;;  %v2396_v46 = vmul.f32 %v4955_v8, %v2395_v28 }
 0x4f7   : > { %3565 = vpow2.f32 %v2359_v34  ;;  %v2336_v53 = vmin.f32 %v4980_v22, 20.0  ;;  %v2280_v35 = vadd.f32 %v3201_v9, %v4917_v58  ;;  %v2274_v14 = vpop.f32.mrb[45].mxu0  ;;  %v2418_v12 = vadd.f32 1.0, %v4989_v51 }
 0x4f8   : > { %3567 = vpow2.f32 %v2357_v63  ;;  %v2335_v1 = vmin.f32 %v4985_v3, 20.0  ;;  %v2275_v24 = vadd.f32 %v4917_v58, %v2274_v14  ;;  %vm2398_vm3 = vcmp.lt.f32.partialorder %v2397_v41, 0.0004427343 }
 0x4f9   : > { %v2363_v5 = vmul.f32 1.442695, %v2336_v53  ;;  %3569 = vlog2.f32 %v2409_v49  ;;  %v5001_v11 = vadd.f32 %v2280_v35, %v4641_v37  ;;  %v2412_v50 = vmul.f32 -0.5, %v4977_v45 }
 0x4fa   : > { %v2361_v26 = vmul.f32 1.442695, %v2335_v1  ;;  %v5005_v4 = vadd.f32 %v2275_v24, %v4634_v36  ;;  %v3204_v42 = vpop.f32.mrb[46].mxu0  ;;  %v2415_v39 = vand.u32 2147483647, %v4977_v45  ;;  %vm2315_vm7 = vcmp.gt.f32.partialorder %v4958_v48, 20.0 }
 0x4fb   : > { %v3558_v62 = vpop.eup %3557  ;;  %v2338_v2 = vmin.f32 %v5001_v11, 20.0  ;;  %v2290_v37 = vadd.f32 %v3204_v42, %v4917_v58  ;;  %v2284_v30 = vpop.f32.mrb[47].mxu0  ;;  %v2424_v41 = vand.u32 2147483647, %v4989_v51  ;;  %vm2318_vm11 = vcmp.gt.f32.partialorder %v4968_v25, 20.0 }
 0x4fc   : > { %v3560_v31 = vpop.eup %3559  ;;  %v2402_v32 = vmul.f32 0.6931472, %v3558_v62  ;;  %3571 = vpow2.f32 %v2361_v26  ;;  %v2337_v36 = vmin.f32 %v5005_v4, 20.0  ;;  %v2285_v23 = vadd.f32 %v4917_v58, %v2284_v30 }
 0x4fd   : > { %v2393_v38 = vmul.f32 0.6931472, %v3560_v31  ;;  %v5010_v8 = vpop.eup %3561  ;;  %3573 = vpow2.f32 %v2363_v5  ;;  %v5022_v6 = vadd.f32 %v2290_v37, %v4656_v57  ;;  %v2421_v58 = vmul.f32 -0.5, %v4989_v51 }
 0x4fe   : > { %v2408_v43 = vsel %vm4992_vm1, %v2405_v20, %v2402_v32  ;;  %v5019_v0 = vpop.eup %3563  ;;  %3575 = vlog2.f32 %v2418_v12  ;;  %v2365_v47 = vmul.f32 1.442695, %v2337_v36  ;;  %v5029_v29 = vadd.f32 %v2285_v23, %v4649_v54 }
 0x4ff   : > { %v2399_v7 = vsel %vm2398_vm3, %v2396_v46, %v2393_v38  ;;  %v2520_v60 = vsel %vm2312_vm0, %v4926_v17, %v2408_v43  ;;  %v2367_v18 = vmul.f32 1.442695, %v2338_v2  ;;  %v2413_v57 = vadd.f32 1.0, %v2412_v50 }
 0x500   : > { %v2519_v59 = vsel %vm2311_vm15, %v4929_v15, %v2399_v7  ;;  %v2427_v15 = vadd.f32 1.0, %v5010_v8  ;;  %3577 = vpow2.f32 %v2365_v47  ;;  %v2340_v17 = vmin.f32 %v5022_v6, 20.0 }
 0x501   : > { %3216 = vmatprep.mubr.msk.f32.mxu1 %vm795_vm2, %v2519_v59  ;;  %v5035_v55 = vpop.eup %3565  ;;  %v2339_v19 = vmin.f32 %v5029_v29, 20.0  ;;  %v2436_v54 = vadd.f32 1.0, %v5019_v0  ;;  %v2422_v44 = vadd.f32 1.0, %v2421_v58  ;;  %v2414_v10 = vmul.f32 %v4977_v45, %v2413_v57 }
 0x502   : > { %3217 = vmatmul.mubr.msk.f32.gmra.mrb[34].mxu1 %vm795_vm2, %v2520_v60  ;;  %v5040_v56 = vpop.eup %3567  ;;  %3579 = vlog2.f32 %v2427_v15  ;;  %v2430_v28 = vmul.f32 -0.5, %v5010_v8  ;;  %v2371_v63 = vmul.f32 1.442695, %v2340_v17  ;;  %vm2416_vm5 = vcmp.lt.f32.partialorder %v2415_v39, 0.0004427343 }
 0x503   : > { %v3570_v16 = vpop.eup %3569  ;;  %v2369_v52 = vmul.f32 1.442695, %v2339_v19  ;;  %3581 = vlog2.f32 %v2436_v54  ;;  %v2445_v34 = vadd.f32 1.0, %v5040_v56  ;;  %v2439_v9 = vmul.f32 -0.5, %v5019_v0 }
 0x504   : > { %v2411_v21 = vmul.f32 0.6931472, %v3570_v16  ;;  %3583 = vpow2.f32 %v2367_v18  ;;  %v2454_v20 = vadd.f32 1.0, %v5035_v55  ;;  %v2431_v1 = vadd.f32 1.0, %v2430_v28 }
 0x505   : > { %3585 = vlog2.f32 %v2445_v34  ;;  %v2433_v35 = vand.u32 2147483647, %v5010_v8  ;;  %v2423_v46 = vmul.f32 %v4989_v51, %v2422_v44  ;;  %v2448_v31 = vmul.f32 -0.5, %v5040_v56 }
 0x506   : > { %v5047_v49 = vpop.eup %3571  ;;  %v2417_v53 = vsel %vm2416_vm5, %v2414_v10, %v2411_v21  ;;  %3587 = vpow2.f32 %v2369_v52  ;;  %vm2425_vm8 = vcmp.lt.f32.partialorder %v2424_v41, 0.0004427343  ;;  %v2442_v24 = vand.u32 2147483647, %v5019_v0 }
 0x507   : > { %v5051_v40 = vpop.eup %3573  ;;  %v2521_v45 = vsel %vm2313_vm4, %v4939_v13, %v2417_v53  ;;  %3589 = vlog2.f32 %v2454_v20  ;;  %v2463_v5 = vadd.f32 1.0, %v5047_v49  ;;  %v2440_v13 = vadd.f32 1.0, %v2439_v9 }
 0x508   : > { %v3576_v62 = vpop.eup %3575  ;;  %3219 = vmatprep.mubr.msk.f32.mxu1 %vm795_vm2, %v2521_v45  ;;  %3591 = vpow2.f32 %v2371_v63  ;;  %v2457_v38 = vmul.f32 -0.5, %v5035_v55  ;;  %v2472_v12 = vadd.f32 1.0, %v5051_v40  ;;  %v2432_v43 = vmul.f32 %v5010_v8, %v2431_v1 }
 0x509   : > { %v2420_v14 = vmul.f32 0.6931472, %v3576_v62  ;;  %3593 = vlog2.f32 %v2463_v5  ;;  %vm5072_vm9 = vcmp.lt.f32.partialorder %v2433_v35, 0.0004427343  ;;  %v2449_v30 = vadd.f32 1.0, %v2448_v31 }
 0x50a   : > { %v5064_v32 = vpop.eup %3577  ;;  %v2451_v7 = vand.u32 2147483647, %v5040_v56  ;;  %3595 = vlog2.f32 %v2472_v12  ;;  %v2466_v8 = vmul.f32 -0.5, %v5047_v49  ;;  %vm2443_vm12 = vcmp.lt.f32.partialorder %v2442_v24, 0.0004427343 }
 0x50b   : > { %v2426_v26 = vsel %vm2425_vm8, %v2423_v46, %v2420_v14  ;;  %v2481_v23 = vadd.f32 1.0, %v5064_v32  ;;  %v2458_v47 = vadd.f32 1.0, %v2457_v38  ;;  %v2460_v58 = vand.u32 2147483647, %v5035_v55 }
 0x50c   : > { %v3580_v42 = vpop.eup %3579  ;;  %v2522_v51 = vsel %vm2314_vm6, %v4936_v61, %v2426_v26  ;;  %v2441_v61 = vmul.f32 %v5019_v0, %v2440_v13  ;;  %v2475_v0 = vmul.f32 -0.5, %v5051_v40  ;;  %vm2317_vm13 = vcmp.gt.f32.partialorder %v4971_v27, 20.0 }
 0x50d   : > { %v3582_v2 = vpop.eup %3581  ;;  %3220 = vmatmul.mubr.msk.f32.gmra.mrb[36].mxu1 %vm795_vm2, %v2522_v51  ;;  %v2429_v37 = vmul.f32 0.6931472, %v3580_v42  ;;  %3597 = vlog2.f32 %v2481_v23  ;;  %v2450_v54 = vmul.f32 %v5040_v56, %v2449_v30  ;;  %vm2452_vm14 = vcmp.lt.f32.partialorder %v2451_v7, 0.0004427343 }
 0x50e   : > { %v2438_v36 = vmul.f32 0.6931472, %v3582_v2  ;;  %v5083_v59 = vpop.eup %3583  ;;  %v2469_v52 = vand.u32 2147483647, %v5047_v49  ;;  %v2459_v28 = vmul.f32 %v5035_v55, %v2458_v47  ;;  %vm2461_vm15 = vcmp.lt.f32.partialorder %v2460_v58, 0.0004427343 }
 0x50f   : > { %v2435_v60 = vsel %vm5072_vm9, %v2432_v43, %v2429_v37  ;;  %v3586_v15 = vpop.eup %3585  ;;  %v2490_v44 = vadd.f32 1.0, %v5083_v59  ;;  %v2476_v56 = vadd.f32 1.0, %v2475_v0  ;;  %vm2319_vm0 = vcmp.gt.f32.partialorder %v4985_v3, 20.0  ;;  %v2915_v0 = vld [vmem:[#allocation2] ss:$0 sm:$0xff] }
 0x510   : > { %v2523_v18 = vsel %vm2315_vm7, %v4958_v48, %v2435_v60  ;;  %v2444_v57 = vsel %vm2443_vm12, %v2441_v61, %v2438_v36  ;;  %v5092_v39 = vpop.eup %3587  ;;  %v2447_v19 = vmul.f32 0.6931472, %v3586_v15  ;;  %v2467_v48 = vadd.f32 1.0, %v2466_v8 }
 0x511   : > { %3222 = vmatprep.mubr.msk.f32.mxu1 %vm795_vm2, %v2523_v18  ;;  %v2524_v17 = vsel %vm2316_vm10, %v4952_v33, %v2444_v57  ;;  %v3590_v16 = vpop.eup %3589  ;;  %v2484_v33 = vmul.f32 -0.5, %v5064_v32  ;;  %3599 = vlog2.f32 %v2490_v44  ;;  %v2478_v9 = vand.u32 2147483647, %v5051_v40 }
 0x512   : > { %3223 = vmatmul.mubr.msk.f32.gmra.mrb[38].mxu1 %vm795_vm2, %v2524_v17  ;;  %v2453_v21 = vsel %vm2452_vm14, %v2450_v54, %v2447_v19  ;;  %v2456_v10 = vmul.f32 0.6931472, %v3590_v16  ;;  %v5105_v34 = vpop.eup %3591  ;;  %v2499_v20 = vadd.f32 1.0, %v5092_v39  ;;  %vm2470_vm1 = vcmp.lt.f32.partialorder %v2469_v52, 0.0004427343 }
 0x513   : > { %v2525_v63 = vsel %vm2317_vm13, %v4971_v27, %v2453_v21  ;;  %v3594_v41 = vpop.eup %3593  ;;  %v2468_v27 = vmul.f32 %v5047_v49, %v2467_v48  ;;  %v2485_v1 = vadd.f32 1.0, %v2484_v33  ;;  %v2493_v35 = vmul.f32 -0.5, %v5083_v59 }
 0x514   : > { %3225 = vmatprep.mubr.msk.f32.mxu1 %vm795_vm2, %v2525_v63  ;;  %v2462_v53 = vsel %vm2461_vm15, %v2459_v28, %v2456_v10  ;;  %v2465_v45 = vmul.f32 0.6931472, %v3594_v41  ;;  %v3596_v62 = vpop.eup %3595  ;;  %3601 = vlog2.f32 %v2499_v20  ;;  %v2508_v14 = vadd.f32 1.0, %v5105_v34 }
 0x515   : > { %v2526_v55 = vsel %vm2318_vm11, %v4968_v25, %v2462_v53  ;;  %v2474_v31 = vmul.f32 0.6931472, %v3596_v62  ;;  %v2477_v5 = vmul.f32 %v5051_v40, %v2476_v56  ;;  %v2487_v13 = vand.u32 2147483647, %v5064_v32 }
 0x516   : > { %3226 = vmatmul.mubr.msk.f32.gmra.mrb[40].mxu1 %vm795_vm2, %v2526_v55  ;;  %v2471_v46 = vsel %vm2470_vm1, %v2468_v27, %v2465_v45  ;;  %vm2479_vm3 = vcmp.lt.f32.partialorder %v2478_v9, 0.0004427343  ;;  %3603 = vlog2.f32 %v2508_v14  ;;  %vm2320_vm4 = vcmp.gt.f32.partialorder %v4980_v22, 20.0 }
 0x517   : > { %v2527_v25 = vsel %vm2319_vm0, %v4985_v3, %v2471_v46  ;;  %v3598_v49 = vpop.eup %3597  ;;  %v2480_v24 = vsel %vm2479_vm3, %v2477_v5, %v2474_v31  ;;  %v2502_v26 = vmul.f32 -0.5, %v5092_v39  ;;  %v2486_v40 = vmul.f32 %v5064_v32, %v2485_v1 }
 0x518   : > { %3228 = vmatprep.mubr.msk.f32.mxu1 %vm795_vm2, %v2527_v25  ;;  %v2528_v38 = vsel %vm2320_vm4, %v4980_v22, %v2480_v24  ;;  %v2483_v12 = vmul.f32 0.6931472, %v3598_v49  ;;  %v2494_v42 = vadd.f32 1.0, %v2493_v35  ;;  %vm2488_vm5 = vcmp.lt.f32.partialorder %v2487_v13, 0.0004427343 }
 0x519   : > { %v2496_v3 = vand.u32 2147483647, %v5083_v59  ;;  %v2511_v51 = vmul.f32 -0.5, %v5105_v34  ;;  %vm2321_vm6 = vcmp.gt.f32.partialorder %v5005_v4, 20.0  ;;  %v2503_v37 = vadd.f32 1.0, %v2502_v26 }
 0x51a   : > { %3229 = vmatmul.mubr.msk.f32.gmra.mrb[42].mxu1 %vm795_vm2, %v2528_v38  ;;  %v2489_v43 = vsel %vm2488_vm5, %v2486_v40, %v2483_v12  ;;  %v2495_v32 = vmul.f32 %v5083_v59, %v2494_v42  ;;  %v2505_v30 = vand.u32 2147483647, %v5092_v39  ;;  %vm2322_vm8 = vcmp.gt.f32.partialorder %v5001_v11, 20.0 }
 0x51b   : > { %v3600_v50 = vpop.eup %3599  ;;  %v2529_v2 = vsel %vm2321_vm6, %v5005_v4, %v2489_v43  ;;  %vm2497_vm7 = vcmp.lt.f32.partialorder %v2496_v3, 0.0004427343  ;;  %v2512_v7 = vadd.f32 1.0, %v2511_v51  ;;  %v2514_v8 = vand.u32 2147483647, %v5105_v34 }
 0x51c   : > { %3231 = vmatprep.mubr.msk.f32.mxu1 %vm795_vm2, %v2529_v2  ;;  %v2492_v22 = vmul.f32 0.6931472, %v3600_v50  ;;  %v2504_v4 = vmul.f32 %v5092_v39, %v2503_v37  ;;  %vm2506_vm9 = vcmp.lt.f32.partialorder %v2505_v30, 0.0004427343  ;;  %vm2323_vm10 = vcmp.gt.f32.partialorder %v5029_v29, 20.0 }
 0x51d   : > { %v2513_v15 = vmul.f32 %v5105_v34, %v2512_v7  ;;  %vm2515_vm11 = vcmp.lt.f32.partialorder %v2514_v8, 0.0004427343  ;;  %vm2324_vm12 = vcmp.gt.f32.partialorder %v5022_v6, 20.0  ;;  %vm2737_vm13 = vcmask 7168  }
 0x51e   : > { %v3602_v36 = vpop.eup %3601  ;;  %v2498_v61 = vsel %vm2497_vm7, %v2495_v32, %v2492_v22 }
 0x51f   : > { %v2530_v23 = vsel %vm2322_vm8, %v5001_v11, %v2498_v61  ;;  %v2501_v60 = vmul.f32 0.6931472, %v3602_v36 }
 0x520   : > { %v3604_v47 = vpop.eup %3603  ;;  %3232 = vmatmul.mubr.msk.f32.gmra.mrb[44].mxu1 %vm795_vm2, %v2530_v23 }
 0x521   : > { %v2507_v59 = vsel %vm2506_vm9, %v2504_v4, %v2501_v60  ;;  %v2510_v58 = vmul.f32 0.6931472, %v3604_v47 }
 0x522   : > { %v2531_v18 = vsel %vm2323_vm10, %v5029_v29, %v2507_v59 }
 0x523   : > { %3234 = vmatprep.mubr.msk.f32.mxu1 %vm795_vm2, %v2531_v18  ;;  %v2516_v11 = vsel %vm2515_vm11, %v2513_v15, %v2510_v58 }
 0x524   : > { %v2532_v57 = vsel %vm2324_vm12, %v5022_v6, %v2516_v11 }
 0x525   : > { %3235 = vmatmul.mubr.msk.f32.gmra.mrb[46].mxu1 %vm795_vm2, %v2532_v57 }
 0x5c4   : > { %v3215_v29 = vpop.f32.mrb[32].mxu1 }
 0x5c5   : > { %v2664_v39 = vadd.f32 %v3215_v29, %v2915_v0  ;;  %v2658_v17 = vpop.f32.mrb[33].mxu1 }
 0x5c6   : > { %v2659_v6 = vadd.f32 %v2915_v0, %v2658_v17 }
 0x5c7   : > { %2739 = vst.msk [vmem:[%s5154_s13 + $0x8] sm:$0xff] %vm2737_vm13, %v2664_v39 }
 0x5c8   : > { %2738 = vst.msk [vmem:[%s5154_s13] sm:$0xff] %vm2737_vm13, %v2659_v6 }
 0x5d5   : > { %v3218_v19 = vpop.f32.mrb[34].mxu1 }
 0x5d6   : > { %v2674_v54 = vadd.f32 %v3218_v19, %v2915_v0  ;;  %v2668_v16 = vpop.f32.mrb[35].mxu1 }
 0x5d7   : > { %v2669_v48 = vadd.f32 %v2915_v0, %v2668_v16 }
 0x5d8   : > { %2741 = vst.msk [vmem:[%s5154_s13 + $0x18] sm:$0xff] %vm2737_vm13, %v2674_v54 }
 0x5d9   : > { %2740 = vst.msk [vmem:[%s5154_s13 + $0x10] sm:$0xff] %vm2737_vm13, %v2669_v48 }
 0x5e0   : > { %v3221_v52 = vpop.f32.mrb[36].mxu1 }
 0x5e1   : > { %v2684_v44 = vadd.f32 %v3221_v52, %v2915_v0  ;;  %v2678_v21 = vpop.f32.mrb[37].mxu1 }
 0x5e2   : > { %v2679_v10 = vadd.f32 %v2915_v0, %v2678_v21 }
 0x5e3   : > { %2743 = vst.msk [vmem:[%s5154_s13 + $0x28] sm:$0xff] %vm2737_vm13, %v2684_v44 }
 0x5e4   : > { %2742 = vst.msk [vmem:[%s5154_s13 + $0x20] sm:$0xff] %vm2737_vm13, %v2679_v10 }
 0x5e5   : > { %v3224_v28 = vpop.f32.mrb[38].mxu1 }
 0x5e6   : > { %v2694_v33 = vadd.f32 %v3224_v28, %v2915_v0  ;;  %v2688_v34 = vpop.f32.mrb[39].mxu1 }
 0x5e7   : > { %v2689_v63 = vadd.f32 %v2915_v0, %v2688_v34 }
 0x5e8   : > { %2745 = vst.msk [vmem:[%s5154_s13 + $0x38] sm:$0xff] %vm2737_vm13, %v2694_v33 }
 0x5e9   : > { %2744 = vst.msk [vmem:[%s5154_s13 + $0x30] sm:$0xff] %vm2737_vm13, %v2689_v63  ;;  %v3227_v56 = vpop.f32.mrb[40].mxu1 }
 0x5ea   : > { %v2704_v41 = vadd.f32 %v3227_v56, %v2915_v0  ;;  %v2698_v53 = vpop.f32.mrb[41].mxu1 }
 0x5eb   : > { %v2699_v9 = vadd.f32 %v2915_v0, %v2698_v53 }
 0x5ec   : > { %2747 = vst.msk [vmem:[%s5154_s13 + $0x48] sm:$0xff] %vm2737_vm13, %v2704_v41 }
 0x5ed   : > { %2746 = vst.msk [vmem:[%s5154_s13 + $0x40] sm:$0xff] %vm2737_vm13, %v2699_v9  ;;  %v3230_v20 = vpop.f32.mrb[42].mxu1 }
 0x5ee   : > { %v2714_v55 = vadd.f32 %v3230_v20, %v2915_v0  ;;  %v2708_v45 = vpop.f32.mrb[43].mxu1 }
 0x5ef   : > { %v2709_v27 = vadd.f32 %v2915_v0, %v2708_v45 }
 0x5f0   : > { %2749 = vst.msk [vmem:[%s5154_s13 + $0x58] sm:$0xff] %vm2737_vm13, %v2714_v55 }
 0x5f1   : > { %2748 = vst.msk [vmem:[%s5154_s13 + $0x50] sm:$0xff] %vm2737_vm13, %v2709_v27 }
 0x5f3   : > { %v3233_v62 = vpop.f32.mrb[44].mxu1 }
 0x5f4   : > { %v2724_v1 = vadd.f32 %v3233_v62, %v2915_v0  ;;  %v2718_v35 = vpop.f32.mrb[45].mxu1 }
 0x5f5   : > { %v2719_v14 = vadd.f32 %v2915_v0, %v2718_v35 }
 0x5f6   : > { %2751 = vst.msk [vmem:[%s5154_s13 + $0x68] sm:$0xff] %vm2737_vm13, %v2724_v1 }
 0x5f7   : > { %2750 = vst.msk [vmem:[%s5154_s13 + $0x60] sm:$0xff] %vm2737_vm13, %v2719_v14 }
 0x5f8   : > { %v3236_v46 = vpop.f32.mrb[46].mxu1 }
 0x5f9   : > { %v2734_v31 = vadd.f32 %v3236_v46, %v2915_v0  ;;  %v2728_v5 = vpop.f32.mrb[47].mxu1 }
 0x5fa   : > { %v2729_v13 = vadd.f32 %v2915_v0, %v2728_v5 }
 0x5fb   : > { %2753 = vst.msk [vmem:[%s5154_s13 + $0x78] sm:$0xff] %vm2737_vm13, %v2734_v31 }
 0x5fc   : > { %2752 = vst.msk [vmem:[%s5154_s13 + $0x70] sm:$0xff] %vm2737_vm13, %v2729_v13 }
 0x5fd PF: > { %s21_s11 = sadd.s32 1, %s3611_s11  }
 0x5fe   : > { %p18_p4 = scmp.ge.s32.totalorder %s21_s11, 4  }
 0x600   :  { %20 = sbr.rel (!%p18_p4) target bundleno = 3 (0x3), region = 90 }

</bundles_post_ra>
